<compile_context>
chip_gen: v5e
topology: v5e:2x2
jax: 0.10.0
libtpu: 0.0.40
codegen_flags: <defaults>
</compile_context>

<pallas_src>
import functools

import jax
import jax.numpy as jnp
from jax import lax
from jax.experimental import pallas as pl
from jax.experimental.pallas import tpu as pltpu

NUM_CAPSULES = 8
OUT_CHANNELS = 32
N_TOT = NUM_CAPSULES * OUT_CHANNELS          # 256 lanes, packed as cap*32 + oc
KSIZE = 9
STRIDE = 2


def _round_up(x, m):
    return (x + m - 1) // m * m


# --------------------------------------------------------------------------- #
# kernel bodies
# --------------------------------------------------------------------------- #
def _group_sum_sq(acc):
    """Per-lane sum of squares over the 8 capsules sharing an out-channel.

    Lanes are packed n = cap*32 + oc; a group is {oc, oc+32, ..., oc+224}.
    Three lane rolls (shifts 32/64/128 tile the 256-lane cycle) + adds produce
    the exact group sum on every lane, on otherwise-idle XLU slots, replacing
    the previous vreg-thrashing (256,256) indicator matmul.
    """
    sq = acc * acc
    sq = sq + pltpu.roll(sq, OUT_CHANNELS, axis=1)
    sq = sq + pltpu.roll(sq, 2 * OUT_CHANNELS, axis=1)
    sq = sq + pltpu.roll(sq, 4 * OUT_CHANNELS, axis=1)
    return sq


def _squash(acc):
    # x * sq/(1+sq)/sqrt(sq) == x * sqrt(sq)/(1+sq); exact divide (epilogue is
    # off the critical path).  sq == 0 -> 0 instead of the reference's NaN.
    sq = _group_sum_sq(acc)
    return acc * (jnp.sqrt(sq) / (1.0 + sq))


def _pc_fullk_kernel(p_ref, w_ref, b_ref, o_ref):
    """Full-K path (VMEM-rich chips): one fused matmul + squash per M tile.

    p_ref: (tm, K) bf16 patches     w_ref: (K, 256) bf16 fused weight (resident)
    b_ref: (1, 256)  f32 bias       o_ref: (tm, 256) f32
    """
    acc = jnp.dot(p_ref[...], w_ref[...], preferred_element_type=jnp.float32)
    acc = acc + b_ref[...].astype(jnp.float32)
    o_ref[...] = _squash(acc).astype(o_ref.dtype)


def _pc_ktiled_kernel(p_ref, w_ref, b_ref, o_ref, acc_ref, *, tk):
    """K-tiled path (VMEM-constrained chips, e.g. v7x): resident weight sliced
    in-kernel, f32 VMEM accumulator with bias folded into the k==0 init, squash
    epilogue at the last K step."""
    k = pl.program_id(1)

    @pl.when(k == 0)
    def _init():
        acc_ref[...] = jnp.broadcast_to(
            b_ref[...].astype(jnp.float32), acc_ref.shape)

    start = pl.multiple_of(k * tk, tk)
    acc_ref[...] += jnp.dot(p_ref[...], w_ref[pl.ds(start, tk), :],
                            preferred_element_type=jnp.float32)

    @pl.when(k == pl.num_programs(1) - 1)
    def _epilogue():
        o_ref[...] = _squash(acc_ref[...]).astype(o_ref.dtype)


# --------------------------------------------------------------------------- #
# generation-aware tiling helpers
# --------------------------------------------------------------------------- #
def _vmem_capacity_bytes():
    try:
        info = pltpu.get_tpu_info()
        for attr in ("vmem_capacity_bytes", "vmem_bytes", "vmem_size_bytes"):
            v = getattr(info, attr, None)
            if v:
                return int(v)
    except Exception:
        pass
    return 64 * 1024 * 1024          # conservative default: v7x per-TC VMEM


def _pick_tm(M, target=512):
    """Largest multiple of 8 that divides M, <= target, preferring >=2 blocks
    along the 'parallel' M axis (both v7x TensorCores get work)."""
    cap = min(target, M)
    best_any, best_multi = 0, 0
    for t in range(8, cap + 1, 8):
        if M % t == 0:
            best_any = t
            if M // t >= 2:
                best_multi = t
    if best_multi:
        return best_multi
    if best_any:
        return best_any
    if M <= target:
        return M                      # full-dim block is always legal
    return _round_up(target, 8)       # padding fallback (rare)


def _ktile_vmem_est(tm, tk, Kres):
    return (2 * tm * tk * 2            # double-buffered bf16 patches tile
            + 2 * Kres * N_TOT * 2     # resident fused weight (worst-case 2x)
            + tm * N_TOT * 4           # f32 accumulator scratch
            + 2 * tm * N_TOT * 4)      # double-buffered f32 output tile


def _fullk_vmem_est(tm, K):
    return 2 * tm * K * 2 + 2 * K * N_TOT * 2 + 2 * tm * N_TOT * 4


def _pick_tk(K, budget_bytes, tm):
    """Largest multiple of 128 dividing K whose VMEM estimate fits the budget;
    falls back to a padded tile if K has no suitable divisor."""
    divisors = [t for t in range(128, K + 1, 128)
                if K % t == 0 and _ktile_vmem_est(tm, t, K) <= budget_bytes]
    if divisors:
        return max(divisors), K
    tk = 128
    for t in range(128, K + 128, 128):
        if _ktile_vmem_est(tm, t, _round_up(K, t)) <= budget_bytes:
            tk = t
    return tk, _round_up(K, tk)


# --------------------------------------------------------------------------- #
# wrapper
# --------------------------------------------------------------------------- #
@functools.partial(
    jax.jit, static_argnames=("force_k_tiling", "tm_override", "tk_override"))
def primary_caps_forward(x, weight, bias, *, force_k_tiling=False,
                         tm_override=None, tk_override=None):
    """x: (B, C, H, W) f32.  weight: (8, 32, C, 9, 9).  bias: (8, 32).
    Returns (B, 32*6*6, 8) f32 — same semantics as the PyTorch PrimaryCaps."""
    B, C, H, W = x.shape
    OH = (H - KSIZE) // STRIDE + 1
    OW = (W - KSIZE) // STRIDE + 1
    assert OH == 6 and OW == 6, "PrimaryCaps.forward hard-codes a 6x6 conv output"
    M = B * OH * OW
    K = C * KSIZE * KSIZE

    # --- patches emitted once, directly in the (M, K) kernel layout, bf16 -----
    # feature ordering of conv_general_dilated_patches is c*81 + kh*9 + kw,
    # which matches weight.reshape(8, 32, C*81) below.
    patches = lax.conv_general_dilated_patches(
        x.astype(jnp.bfloat16), filter_shape=(KSIZE, KSIZE),
        window_strides=(STRIDE, STRIDE), padding="VALID",
        dimension_numbers=("NCHW", "OIHW", "NHWC"))       # (B, 6, 6, C*81)
    patches = patches.reshape(M, K)

    # fused weight: column = cap*32 + oc, row = c*81 + kh*9 + kw
    w2 = weight.reshape(NUM_CAPSULES, OUT_CHANNELS, K)
    w2 = w2.transpose(2, 0, 1).reshape(K, N_TOT).astype(jnp.bfloat16)
    b2 = bias.reshape(1, N_TOT).astype(jnp.float32)

    # --- generation-aware tiling ----------------------------------------------
    capacity = _vmem_capacity_bytes()
    budget = max(capacity - (16 << 20), 32 << 20)
    tm = tm_override if tm_override is not None else _pick_tm(M)
    Mpad = _round_up(M, tm)

    full_k = (not force_k_tiling) and (_fullk_vmem_est(tm, K) <= budget)
    if full_k:
        tk, Kpad = K, K
        vmem_est = _fullk_vmem_est(tm, K)
    else:
        if tk_override is not None:
            tk, Kpad = tk_override, _round_up(K, tk_override)
        else:
            tk, Kpad = _pick_tk(K, budget, tm)
        vmem_est = _ktile_vmem_est(tm, tk, Kpad)

    if Mpad != M or Kpad != K:     # not taken when tiles divide exactly
        patches = jnp.pad(patches, ((0, Mpad - M), (0, Kpad - K)))
    if Kpad != K:
        w2 = jnp.pad(w2, ((0, Kpad - K), (0, 0)))

    vmem_limit = int(min(capacity - (12 << 20),
                         max(48 << 20, vmem_est + (16 << 20))))
    vmem_limit = max(vmem_limit, 32 << 20)

    if full_k:
        out = pl.pallas_call(
            _pc_fullk_kernel,
            out_shape=jax.ShapeDtypeStruct((Mpad, N_TOT), jnp.float32),
            grid_spec=pltpu.PrefetchScalarGridSpec(
                num_scalar_prefetch=0,
                grid=(Mpad // tm,),
                in_specs=[
                    pl.BlockSpec((tm, K), lambda i: (i, 0)),       # patches
                    pl.BlockSpec((K, N_TOT), lambda i: (0, 0)),    # weight (resident)
                    pl.BlockSpec((1, N_TOT), lambda i: (0, 0)),    # bias
                ],
                out_specs=pl.BlockSpec((tm, N_TOT), lambda i: (i, 0)),
            ),
            compiler_params=pltpu.CompilerParams(
                dimension_semantics=("parallel",),
                vmem_limit_bytes=vmem_limit,
            ),
        )(patches, w2, b2)
    else:
        out = pl.pallas_call(
            functools.partial(_pc_ktiled_kernel, tk=tk),
            out_shape=jax.ShapeDtypeStruct((Mpad, N_TOT), jnp.float32),
            grid_spec=pltpu.PrefetchScalarGridSpec(
                num_scalar_prefetch=0,
                grid=(Mpad // tm, Kpad // tk),
                in_specs=[
                    pl.BlockSpec((tm, tk), lambda i, k: (i, k)),        # patches
                    pl.BlockSpec((Kpad, N_TOT), lambda i, k: (0, 0)),   # weight (resident)
                    pl.BlockSpec((1, N_TOT), lambda i, k: (0, 0)),      # bias
                ],
                out_specs=pl.BlockSpec((tm, N_TOT), lambda i, k: (i, 0)),
                scratch_shapes=[pltpu.VMEM((tm, N_TOT), jnp.float32)],
            ),
            compiler_params=pltpu.CompilerParams(
                dimension_semantics=("parallel", "arbitrary"),
                vmem_limit_bytes=vmem_limit,
            ),
        )(patches, w2, b2)

    # --- restore the PyTorch output layout (cheap glue) -----------------------
    # out[b*36 + oh*6 + ow, cap*32 + oc] -> u[b, oc*36 + oh*6 + ow, cap]
    out = out[:M].reshape(B, OH, OW, NUM_CAPSULES, OUT_CHANNELS)
    out = out.transpose(0, 4, 1, 2, 3)                    # (B, 32, 6, 6, 8)
    return out.reshape(B, OUT_CHANNELS * OH * OW, NUM_CAPSULES)


# --------------------------------------------------------------------------- #
# pure-JAX reference (verification)
# --------------------------------------------------------------------------- #
def _reference_forward(x, weight, bias):
    """f32 replica of the PyTorch PrimaryCaps module."""
    B = x.shape[0]
    us = []
    for cap in range(NUM_CAPSULES):
        y = lax.conv_general_dilated(
            x, weight[cap], window_strides=(STRIDE, STRIDE), padding="VALID",
            dimension_numbers=("NCHW", "OIHW", "NCHW"))
        y = y + bias[cap][None, :, None, None]
        us.append(y.reshape(B, OUT_CHANNELS * 6 * 6, 1))
    u = jnp.concatenate(us, axis=-1)
    sq = jnp.sum(u * u, axis=-1, keepdims=True)
    return (sq / (1.0 + sq)) * u / jnp.sqrt(sq)


if __name__ == "__main__":
    # PrimaryCaps.forward hard-codes 32*6*6, so the spatial input must be 20x20
    # (-> 6x6 stride-2 conv output); in_channels is shrunk from 256 to 16.
    B, C_IN, H, W = 2, 16, 20, 20

    key = jax.random.PRNGKey(0)
    kx, kw, kb = jax.random.split(key, 3)
    x = jax.random.normal(kx, (B, C_IN, H, W), dtype=jnp.float32)
    weight = 0.05 * jax.random.normal(
        kw, (NUM_CAPSULES, OUT_CHANNELS, C_IN, KSIZE, KSIZE), dtype=jnp.float32)
    bias = 0.01 * jax.random.normal(kb, (NUM_CAPSULES, OUT_CHANNELS), dtype=jnp.float32)

    ref = jax.block_until_ready(_reference_forward(x, weight, bias))

    # full-K path (auto-selected tiles — what v5e/v6e take at real size)
    out = jax.block_until_ready(primary_caps_forward(x, weight, bias))
    assert out.shape == (B, OUT_CHANNELS * 6 * 6, NUM_CAPSULES)
    assert jnp.allclose(out, ref, rtol=3e-2, atol=3e-2), "full-K path mismatch"

    # K-tiled path with resident weight (what a VMEM-constrained v7x takes)
    out_kt = jax.block_until_ready(
        primary_caps_forward(x, weight, bias, force_k_tiling=True, tk_override=512))
    assert jnp.allclose(out_kt, ref, rtol=3e-2, atol=3e-2), "K-tiled path mismatch"

    print("KERNEL_OK")
</pallas_src>

<mosaic_0001>
module attributes {stable_mosaic.version = 11 : i64} {
  func.func @_pc_fullk_kernel(%arg0: i32, %arg1: memref<24x1296xbf16, #tpu.memory_space<vmem>>, %arg2: memref<1296x256xbf16, #tpu.memory_space<vmem>>, %arg3: memref<1x256xf32, #tpu.memory_space<vmem>>, %arg4: memref<24x256xf32, #tpu.memory_space<vmem>>) attributes {dimension_semantics = [#tpu.dimension_semantics<parallel>], iteration_bounds = array<i64: 3>, scalar_prefetch = 0 : i64, scratch_operands = 0 : i64, tpu.core_type = #tpu.core_type<tc>, window_params = [{transform_indices = @transform_0, window_bounds = array<i64: 24, 1296>}, {pipeline_mode = #tpu.pipeline_mode<synchronous>, transform_indices = @transform_1, window_bounds = array<i64: 1296, 256>}, {pipeline_mode = #tpu.pipeline_mode<synchronous>, transform_indices = @transform_2, window_bounds = array<i64: 1, 256>}, {transform_indices = @transform_3, window_bounds = array<i64: 24, 256>}]} {
    %c0 = arith.constant 0 : index
    %c0_0 = arith.constant 0 : index
    %0 = vector.load %arg1[%c0, %c0_0] : memref<24x1296xbf16, #tpu.memory_space<vmem>>, vector<24x1296xbf16>
    %c0_1 = arith.constant 0 : index
    %c0_2 = arith.constant 0 : index
    %1 = vector.load %arg2[%c0_1, %c0_2] : memref<1296x256xbf16, #tpu.memory_space<vmem>>, vector<1296x256xbf16>
    %cst = arith.constant dense<0.000000e+00> : vector<24x256xf32>
    %2 = tpu.matmul %0, %1, %cst {dimension_numbers = #tpu.dot_dimension_numbers<[1], [0], [0], [1], [0, 0, 1, 1], [], []>} : vector<24x1296xbf16>, vector<1296x256xbf16>, vector<24x256xf32> -> vector<24x256xf32>
    %c0_3 = arith.constant 0 : index
    %c0_4 = arith.constant 0 : index
    %3 = vector.load %arg3[%c0_3, %c0_4] : memref<1x256xf32, #tpu.memory_space<vmem>>, vector<1x256xf32>
    %4 = vector.broadcast %3 : vector<1x256xf32> to vector<24x256xf32>
    %5 = arith.addf %2, %4 : vector<24x256xf32>
    %6 = arith.mulf %5, %5 : vector<24x256xf32>
    %c32_i32 = arith.constant 32 : i32
    %7 = tpu.dynamic_rotate %6 by %c32_i32 dim 1 : vector<24x256xf32>, i32 -> vector<24x256xf32>
    %8 = arith.addf %6, %7 : vector<24x256xf32>
    %c64_i32 = arith.constant 64 : i32
    %9 = tpu.dynamic_rotate %8 by %c64_i32 dim 1 : vector<24x256xf32>, i32 -> vector<24x256xf32>
    %10 = arith.addf %8, %9 : vector<24x256xf32>
    %c128_i32 = arith.constant 128 : i32
    %11 = tpu.dynamic_rotate %10 by %c128_i32 dim 1 : vector<24x256xf32>, i32 -> vector<24x256xf32>
    %12 = arith.addf %10, %11 : vector<24x256xf32>
    %13 = math.sqrt %12 : vector<24x256xf32>
    %cst_5 = arith.constant 1.000000e+00 : f32
    %14 = vector.broadcast %cst_5 : f32 to vector<24x256xf32>
    %15 = arith.addf %14, %12 : vector<24x256xf32>
    %16 = arith.divf %13, %15 : vector<24x256xf32>
    %17 = arith.mulf %5, %16 : vector<24x256xf32>
    %c0_6 = arith.constant 0 : index
    %c0_7 = arith.constant 0 : index
    %18 = vector.load %arg4[%c0_6, %c0_7] : memref<24x256xf32, #tpu.memory_space<vmem>>, vector<24x256xf32>
    tpu.vector_store %arg4[%c0_6, %c0_7], %17 {strides = array<i32>} : memref<24x256xf32, #tpu.memory_space<vmem>>, vector<24x256xf32>,
    return
  }
  func.func @transform_0(%arg0: i32) -> (i32, i32) {
    %c0_i32 = arith.constant 0 : i32
    %c0_i32_0 = arith.constant 0 : i32
    return %arg0, %c0_i32 : i32, i32
  }
  func.func @transform_1(%arg0: i32) -> (i32, i32) {
    %c0_i32 = arith.constant 0 : i32
    %c0_i32_0 = arith.constant 0 : i32
    %c0_i32_1 = arith.constant 0 : i32
    return %c0_i32, %c0_i32_0 : i32, i32
  }
  func.func @transform_2(%arg0: i32) -> (i32, i32) {
    %c0_i32 = arith.constant 0 : i32
    %c0_i32_0 = arith.constant 0 : i32
    %c0_i32_1 = arith.constant 0 : i32
    return %c0_i32, %c0_i32_0 : i32, i32
  }
  func.func @transform_3(%arg0: i32) -> (i32, i32) {
    %c0_i32 = arith.constant 0 : i32
    %c0_i32_0 = arith.constant 0 : i32
    return %arg0, %c0_i32 : i32, i32
  }
}

</mosaic_0001>

<bundles_post_ra>
// kernel: primary_caps_forward.1
= control target key start
LH: loop header
LB: loop body
LE: loop exit
PB: predicated region body
PF: predicated region fallthrough
CT: control target
= control target key end

     0   :  { %s2829_s12 = smov 0   ;;  %s4045_s0 = inlined_call_operand.vmem [shape: bf16[72,1296], index: 0, kind: input, shape index: {}]   ;;  %s4046_s1 = inlined_call_operand.vmem [shape: bf16[1296,256], index: 1, kind: input, shape index: {}]   ;;  %s4047_s2 = inlined_call_operand.vmem [shape: f32[1,256], index: 2, kind: input, shape index: {}]   ;;  %s4048_s3 = inlined_call_operand.vmem [shape: f32[72,256], index: 3, kind: output, shape index: {}]  }
   0x1 LB: > { %s1887_s13 = sadd.s32 4294967295, %s2805_s12   ;;  %p1891_p0 = scmp.ge.s32.totalorder %s2805_s12, 1  ;;  %s2805_s12 = sphi %s2829_s12, %s13_s12  }
   0x2   : > { %p139_p1 = scmp.lt.s32.totalorder %s2805_s12, 4 }
   0x4   : > { %p140_p2 = pnand %p1891_p0, %p139_p1 }
   0x5   : > { %s165_s24 = smul.u32 (!%p140_p2), 3, %s1887_s13  ;;  %s2807_s4 = smov (!%p140_p2), 32  }
   0x6   : > { %143 = sbr.rel (%p140_p2) target bundleno = 610 (0x262), region = 32  ;;  %s2808_s5 = smov (!%p140_p2), 64  }
   0x7   : > { %p166_p3 = scmp.lt.s32.totalorder (!%p140_p2), %s165_s24, 8 }
   0xb   : > { %v1997_v0 = vld [vmem:[%s4046_s1 + $0x70] sm:$0xf]  ;;  %v2620_v1 = vld [vmem:[%s4046_s1 + $0x74] sm:$0xf0]  ;;  %v1989_v11 = vld [vmem:[%s4046_s1 + $0x60] sm:$0xf] }
   0xc   : > { %v2061_v2 = vld [vmem:[%s4046_s1 + $0xf0] sm:$0xf]  ;;  %v1998_v3 = vor.u32 %v2620_v1, %v1997_v0  ;;  %v2636_v4 = vld [vmem:[%s4046_s1 + $0xf4] sm:$0xf0]  ;;  %v2618_v13 = vld [vmem:[%s4046_s1 + $0x64] sm:$0xf0] }
   0xd   : > { %v2125_v5 = vld [vmem:[%s4046_s1 + $0x170] sm:$0xf]  ;;  %v2652_v6 = vld [vmem:[%s4046_s1 + $0x174] sm:$0xf0]  ;;  %v2062_v7 = vor.u32 %v2636_v4, %v2061_v2  ;;  %v2053_v14 = vld [vmem:[%s4046_s1 + $0xe0] sm:$0xf]  ;;  %v1990_v16 = vor.u32 %v2618_v13, %v1989_v11 }
   0xe   : > { %v2126_v8 = vor.u32 %v2652_v6, %v2125_v5  ;;  %v2189_v9 = vld [vmem:[%s4046_s1 + $0x1f0] sm:$0xf]  ;;  %v2668_v10 = vld [vmem:[%s4046_s1 + $0x1f4] sm:$0xf0]  ;;  %1276 = vmatpush.bf16.msra.mxu0 %v1998_v3  ;;  %v2634_v15 = vld [vmem:[%s4046_s1 + $0xe4] sm:$0xf0] }
   0xf   : > { %v2190_v12 = vor.u32 %v2668_v10, %v2189_v9  ;;  %1294 = vmatpush.bf16.msra.mxu1 %v2062_v7  ;;  %v2054_v17 = vor.u32 %v2634_v15, %v2053_v14  ;;  %v2117_v18 = vld [vmem:[%s4046_s1 + $0x160] sm:$0xf]  ;;  %v2650_v19 = vld [vmem:[%s4046_s1 + $0x164] sm:$0xf0]  ;;  %v1981_v23 = vld [vmem:[%s4046_s1 + $0x50] sm:$0xf] }
  0x10   : > { %1312 = vmatpush.bf16.msra.mxu2 %v2126_v8  ;;  %v2181_v20 = vld [vmem:[%s4046_s1 + $0x1e0] sm:$0xf]  ;;  %v2118_v21 = vor.u32 %v2650_v19, %v2117_v18  ;;  %v2666_v22 = vld [vmem:[%s4046_s1 + $0x1e4] sm:$0xf0]  ;;  %v2616_v24 = vld [vmem:[%s4046_s1 + $0x54] sm:$0xf0] }
  0x11   : > { %1330 = vmatpush.bf16.msra.mxu3 %v2190_v12  ;;  %v2182_v25 = vor.u32 %v2666_v22, %v2181_v20  ;;  %v2045_v26 = vld [vmem:[%s4046_s1 + $0xd0] sm:$0xf]  ;;  %v2632_v27 = vld [vmem:[%s4046_s1 + $0xd4] sm:$0xf0]  ;;  %v1982_v29 = vor.u32 %v2616_v24, %v1981_v23  ;;  %v1973_v35 = vld [vmem:[%s4046_s1 + $0x40] sm:$0xf] }
  0x12   : > { %v2109_v28 = vld [vmem:[%s4046_s1 + $0x150] sm:$0xf]  ;;  %1277 = vmatpush.bf16.msra.mxu0 %v1990_v16  ;;  %v2648_v30 = vld [vmem:[%s4046_s1 + $0x154] sm:$0xf0]  ;;  %v2046_v33 = vor.u32 %v2632_v27, %v2045_v26  ;;  %v2614_v36 = vld [vmem:[%s4046_s1 + $0x44] sm:$0xf0] }
  0x13   : > { %v2173_v31 = vld [vmem:[%s4046_s1 + $0x1d0] sm:$0xf]  ;;  %v2664_v32 = vld [vmem:[%s4046_s1 + $0x1d4] sm:$0xf0]  ;;  %1295 = vmatpush.bf16.msra.mxu1 %v2054_v17  ;;  %v2110_v34 = vor.u32 %v2648_v30, %v2109_v28  ;;  %v2037_v37 = vld [vmem:[%s4046_s1 + $0xc0] sm:$0xf]  ;;  %v1974_v44 = vor.u32 %v2614_v36, %v1973_v35 }
  0x14   : > { %1313 = vmatpush.bf16.msra.mxu2 %v2118_v21  ;;  %v2174_v38 = vor.u32 %v2664_v32, %v2173_v31  ;;  %v2630_v39 = vld [vmem:[%s4046_s1 + $0xc4] sm:$0xf0]  ;;  %v2101_v40 = vld [vmem:[%s4046_s1 + $0x140] sm:$0xf]  ;;  %v1965_v47 = vld [vmem:[%s4046_s1 + $0x30] sm:$0xf] }
  0x15   : > { %1331 = vmatpush.bf16.msra.mxu3 %v2182_v25  ;;  %v2646_v41 = vld [vmem:[%s4046_s1 + $0x144] sm:$0xf0]  ;;  %v2165_v42 = vld [vmem:[%s4046_s1 + $0x1c0] sm:$0xf]  ;;  %v2038_v45 = vor.u32 %v2630_v39, %v2037_v37  ;;  %v2612_v48 = vld [vmem:[%s4046_s1 + $0x34] sm:$0xf0] }
  0x16   : > { %v2662_v43 = vld [vmem:[%s4046_s1 + $0x1c4] sm:$0xf0]  ;;  %1278 = vmatpush.bf16.msra.mxu0 %v1982_v29  ;;  %v2102_v46 = vor.u32 %v2646_v41, %v2101_v40  ;;  %v2029_v49 = vld [vmem:[%s4046_s1 + $0xb0] sm:$0xf]  ;;  %v2628_v51 = vld [vmem:[%s4046_s1 + $0xb4] sm:$0xf0]  ;;  %v1966_v56 = vor.u32 %v2612_v48, %v1965_v47 }
  0x17   : > { %1296 = vmatpush.bf16.msra.mxu1 %v2046_v33  ;;  %v2166_v50 = vor.u32 %v2662_v43, %v2165_v42  ;;  %v2093_v52 = vld [vmem:[%s4046_s1 + $0x130] sm:$0xf]  ;;  %v2644_v53 = vld [vmem:[%s4046_s1 + $0x134] sm:$0xf0]  ;;  %v2030_v57 = vor.u32 %v2628_v51, %v2029_v49  ;;  %v1957_v59 = vld [vmem:[%s4046_s1 + $0x20] sm:$0xf] }
  0x18   : > { %1314 = vmatpush.bf16.msra.mxu2 %v2110_v34  ;;  %v2157_v54 = vld [vmem:[%s4046_s1 + $0x1b0] sm:$0xf]  ;;  %v2660_v55 = vld [vmem:[%s4046_s1 + $0x1b4] sm:$0xf0]  ;;  %v2094_v58 = vor.u32 %v2644_v53, %v2093_v52  ;;  %v2610_v60 = vld [vmem:[%s4046_s1 + $0x24] sm:$0xf0] }
  0x19   : > { %1332 = vmatpush.bf16.msra.mxu3 %v2174_v38  ;;  %v2021_v61 = vld [vmem:[%s4046_s1 + $0xa0] sm:$0xf]  ;;  %v2158_v62 = vor.u32 %v2660_v55, %v2157_v54  ;;  %v2626_v63 = vld [vmem:[%s4046_s1 + $0xa4] sm:$0xf0]  ;;  %v1958_v4 = vor.u32 %v2610_v60, %v1957_v59  ;;  %v1949_v5 = vld [vmem:[%s4046_s1 + $0x10] sm:$0xf] }
  0x1a   : > { %1279 = vmatpush.bf16.msra.mxu0 %v1974_v44  ;;  %v2085_v0 = vld [vmem:[%s4046_s1 + $0x120] sm:$0xf]  ;;  %v2642_v1 = vld [vmem:[%s4046_s1 + $0x124] sm:$0xf0]  ;;  %v2608_v6 = vld [vmem:[%s4046_s1 + $0x14] sm:$0xf0]  ;;  %v2022_v7 = vor.u32 %v2626_v63, %v2021_v61 }
  0x1b   : > { %1297 = vmatpush.bf16.msra.mxu1 %v2038_v45  ;;  %v2149_v2 = vld [vmem:[%s4046_s1 + $0x1a0] sm:$0xf]  ;;  %v2658_v3 = vld [vmem:[%s4046_s1 + $0x1a4] sm:$0xf0]  ;;  %v2086_v8 = vor.u32 %v2642_v1, %v2085_v0  ;;  %v2013_v9 = vld [vmem:[%s4046_s1 + $0x90] sm:$0xf]  ;;  %v1950_v18 = vor.u32 %v2608_v6, %v1949_v5 }
  0x1c   : > { %1315 = vmatpush.bf16.msra.mxu2 %v2102_v46  ;;  %v2624_v10 = vld [vmem:[%s4046_s1 + $0x94] sm:$0xf0]  ;;  %v2077_v11 = vld [vmem:[%s4046_s1 + $0x110] sm:$0xf]  ;;  %v2150_v12 = vor.u32 %v2658_v3, %v2149_v2  ;;  %v1941_v16 = vld [vmem:[%s4046_s1] sm:$0xf] }
  0x1d   : > { %1333 = vmatpush.bf16.msra.mxu3 %v2166_v50  ;;  %v2640_v13 = vld [vmem:[%s4046_s1 + $0x114] sm:$0xf0]  ;;  %v2141_v14 = vld [vmem:[%s4046_s1 + $0x190] sm:$0xf]  ;;  %v2606_v17 = vld [vmem:[%s4046_s1 + $0x4] sm:$0xf0]  ;;  %v2014_v21 = vor.u32 %v2624_v10, %v2013_v9 }
  0x1e   : > { %1280 = vmatpush.bf16.msra.mxu0 %v1966_v56  ;;  %v2656_v15 = vld [vmem:[%s4046_s1 + $0x194] sm:$0xf0]  ;;  %v2005_v19 = vld [vmem:[%s4046_s1 + $0x80] sm:$0xf]  ;;  %v2622_v20 = vld [vmem:[%s4046_s1 + $0x84] sm:$0xf0]  ;;  %v2078_v22 = vor.u32 %v2640_v13, %v2077_v11  ;;  %v1942_v32 = vor.u32 %v2606_v17, %v1941_v16 }
  0x1f   : > { %1298 = vmatpush.bf16.msra.mxu1 %v2030_v57  ;;  %v2069_v23 = vld [vmem:[%s4046_s1 + $0x100] sm:$0xf]  ;;  %v2638_v24 = vld [vmem:[%s4046_s1 + $0x104] sm:$0xf0]  ;;  %v2142_v26 = vor.u32 %v2656_v15, %v2141_v14  ;;  %s4050_s24 = smov (!%p166_p3, %s165_s24), 8  ;;  %v2006_v35 = vor.u32 %v2622_v20, %v2005_v19  ;;  %vm1269_vm0 = vcmask 130048  }
  0x20   : > { %1316 = vmatpush.bf16.msra.mxu2 %v2094_v58  ;;  %v2133_v25 = vld [vmem:[%s4046_s1 + $0x180] sm:$0xf]  ;;  %v2654_v27 = vld [vmem:[%s4046_s1 + $0x184] sm:$0xf0]  ;;  %v2253_v28 = vld [vmem:[%s4046_s1 + $0x270] sm:$0xf]  ;;  %v2070_v36 = vor.u32 %v2638_v24, %v2069_v23 }
  0x21   : > { %1334 = vmatpush.bf16.msra.mxu3 %v2158_v62  ;;  %v2684_v29 = vld [vmem:[%s4046_s1 + $0x274] sm:$0xf0]  ;;  %v2317_v30 = vld [vmem:[%s4046_s1 + $0x2f0] sm:$0xf]  ;;  %s2776_s26 = smul.u32 44, %s4050_s24  ;;  %v2134_v40 = vor.u32 %v2654_v27, %v2133_v25  ;;  %s2593_s6 = sshll.u32 %s4050_s24, 4 }
  0x22   : > { %1281 = vmatpush.bf16.msra.mxu0 %v1958_v4  ;;  %v2700_v31 = vld [vmem:[%s4046_s1 + $0x2f4] sm:$0xf0]  ;;  %v2381_v33 = vld [vmem:[%s4046_s1 + $0x370] sm:$0xf]  ;;  %v2245_v39 = vld [vmem:[%s4046_s1 + $0x260] sm:$0xf]  ;;  %v2254_v41 = vor.u32 %v2684_v29, %v2253_v28  ;;  %s4022_s7 = scalar_lea.vmem %s4048_s3, %s2593_s6 }
  0x23   : > { %1299 = vmatpush.bf16.msra.mxu1 %v2022_v7  ;;  %v2716_v34 = vld [vmem:[%s4046_s1 + $0x374] sm:$0xf0]  ;;  %v2445_v37 = vld [vmem:[%s4046_s1 + $0x3f0] sm:$0xf]  ;;  %s3064_s11 = scalar_lea.vmem %s4045_s0, %s2776_s26  ;;  %v2682_v42 = vld [vmem:[%s4046_s1 + $0x264] sm:$0xf0]  ;;  %v2318_v48 = vor.u32 %v2700_v31, %v2317_v30 }
  0x24   : > { %1317 = vmatpush.bf16.msra.mxu2 %v2086_v8  ;;  %v2732_v38 = vld [vmem:[%s4046_s1 + $0x3f4] sm:$0xf0]  ;;  %v2309_v43 = vld [vmem:[%s4046_s1 + $0x2e0] sm:$0xf]  ;;  %v2698_v44 = vld [vmem:[%s4046_s1 + $0x2e4] sm:$0xf0]  ;;  %v2382_v55 = vor.u32 %v2716_v34, %v2381_v33  ;;  %v2246_v60 = vor.u32 %v2682_v42, %v2245_v39 }
  0x25   : > { %1335 = vmatpush.bf16.msra.mxu3 %v2150_v12  ;;  %v1897_v45 = vld [vmem:[%s3064_s11] sm:$0xf]  ;;  %v2599_v46 = vld [vmem:[%s3064_s11 + $0x28] sm:$0xf0]  ;;  %v2594_v47 = vld [vmem:[%s3064_s11 + $0x4] sm:$0xf]  ;;  %v2446_v59 = vor.u32 %v2732_v38, %v2445_v37  ;;  %v2310_v0 = vor.u32 %v2698_v44, %v2309_v43 }
  0x26   : > { %1282 = vmatpush.bf16.msra.mxu0 %v1950_v18  ;;  %v3078_v49 = vor.u32 %v2599_v46, %v1897_v45  ;;  %v1899_v50 = vld [vmem:[%s3064_s11 + $0x2c] sm:$0xf0]  ;;  %v1905_v51 = vld [vmem:[%s3064_s11 + $0x8] sm:$0xf]  ;;  %v2600_v52 = vld [vmem:[%s3064_s11 + $0x30] sm:$0xf0] }
  0x27   : > { %1300 = vmatpush.bf16.msra.mxu1 %v2014_v21  ;;  %v3083_v53 = vor.u32 %v2594_v47, %v1899_v50  ;;  %v3085_v54 = vor.u32 %v2600_v52, %v1905_v51  ;;  %v2595_v56 = vld [vmem:[%s3064_s11 + $0xc] sm:$0xf]  ;;  %v1907_v57 = vld [vmem:[%s3064_s11 + $0x34] sm:$0xf0]  ;;  %v2373_v61 = vld [vmem:[%s4046_s1 + $0x360] sm:$0xf] }
  0x28   : > { %1318 = vmatpush.bf16.msra.mxu2 %v2078_v22  ;;  %v3089_v58 = vor.u32 %v2595_v56, %v1907_v57  ;;  %v2714_v62 = vld [vmem:[%s4046_s1 + $0x364] sm:$0xf0]  ;;  %v2437_v63 = vld [vmem:[%s4046_s1 + $0x3e0] sm:$0xf]  ;;  %v2237_v2 = vld [vmem:[%s4046_s1 + $0x250] sm:$0xf] }
  0x29   : > { %1336 = vmatpush.bf16.msra.mxu3 %v2142_v26  ;;  %v2730_v1 = vld [vmem:[%s4046_s1 + $0x3e4] sm:$0xf0]  ;;  %v2680_v3 = vld [vmem:[%s4046_s1 + $0x254] sm:$0xf0]  ;;  %v2301_v4 = vld [vmem:[%s4046_s1 + $0x2d0] sm:$0xf]  ;;  %v2374_v6 = vor.u32 %v2714_v62, %v2373_v61 }
  0x2a   : > { %1283 = vmatpush.bf16.msra.mxu0 %v1942_v32  ;;  %v2696_v5 = vld [vmem:[%s4046_s1 + $0x2d4] sm:$0xf0]  ;;  %v2438_v7 = vor.u32 %v2730_v1, %v2437_v63  ;;  %v2238_v8 = vor.u32 %v2680_v3, %v2237_v2  ;;  %v2365_v9 = vld [vmem:[%s4046_s1 + $0x350] sm:$0xf]  ;;  %v2229_v14 = vld [vmem:[%s4046_s1 + $0x240] sm:$0xf] }
  0x2b   : > { %1301 = vmatpush.bf16.msra.mxu1 %v2006_v35  ;;  %v2712_v10 = vld [vmem:[%s4046_s1 + $0x354] sm:$0xf0]  ;;  %v2429_v11 = vld [vmem:[%s4046_s1 + $0x3d0] sm:$0xf]  ;;  %v2302_v12 = vor.u32 %v2696_v5, %v2301_v4  ;;  %v2678_v15 = vld [vmem:[%s4046_s1 + $0x244] sm:$0xf0] }
  0x2c   : > { %1319 = vmatpush.bf16.msra.mxu2 %v2070_v36  ;;  %v2728_v13 = vld [vmem:[%s4046_s1 + $0x3d4] sm:$0xf0]  ;;  %v2293_v16 = vld [vmem:[%s4046_s1 + $0x2c0] sm:$0xf]  ;;  %v2694_v17 = vld [vmem:[%s4046_s1 + $0x2c4] sm:$0xf0]  ;;  %v2366_v19 = vor.u32 %v2712_v10, %v2365_v9  ;;  %v2230_v22 = vor.u32 %v2678_v15, %v2229_v14 }
  0x2d   : > { %1337 = vmatpush.bf16.msra.mxu3 %v2134_v40  ;;  %1284 = vmatmul.bf16.vlgmr.msra.gmra.mxu0 %v3078_v49  ;;  %v192_v18 = vld [vmem:[%s3064_s11 + $0x58] sm:$0xff]  ;;  %v193_v20 = vld [vmem:[%s3064_s11 + $0x60] sm:$0xff]  ;;  %v2430_v21 = vor.u32 %v2728_v13, %v2429_v11  ;;  %v2710_v24 = vld [vmem:[%s4046_s1 + $0x344] sm:$0xf0]  ;;  %v2294_v26 = vor.u32 %v2694_v17, %v2293_v16 }
  0x2e   : > { %1348 = vmatpush.bf16.msrb.mxu0 %v2254_v41  ;;  %1302 = vmatmul.bf16.vlgmr.msra.gmra.mxu1 %v3083_v53  ;;  %v2357_v23 = vld [vmem:[%s4046_s1 + $0x340] sm:$0xf]  ;;  %v2726_v27 = vld [vmem:[%s4046_s1 + $0x3c4] sm:$0xf0]  ;;  %v406_v28 = vunpack.c.l.b16 %v192_v18  ;;  %v2221_v29 = vld [vmem:[%s4046_s1 + $0x230] sm:$0xf]  ;;  %v407_v31 = vunpack.c.h.b16 %v192_v18  ;;  %v408_v32 = vunpack.c.l.b16 %v193_v20  ;;  %v409_v36 = vunpack.c.h.b16 %v193_v20 }
  0x2f   : > { %1366 = vmatpush.bf16.msrb.mxu1 %v2318_v48  ;;  %1320 = vmatmul.bf16.vlgmr.msra.gmra.mxu2 %v3085_v54  ;;  %v2421_v25 = vld [vmem:[%s4046_s1 + $0x3c0] sm:$0xf]  ;;  %v2676_v30 = vld [vmem:[%s4046_s1 + $0x234] sm:$0xf0]  ;;  %v2285_v33 = vld [vmem:[%s4046_s1 + $0x2b0] sm:$0xf]  ;;  %v2358_v35 = vor.u32 %v2710_v24, %v2357_v23 }
  0x30   : > { %1384 = vmatpush.bf16.msrb.mxu2 %v2382_v55  ;;  %1338 = vmatmul.bf16.vlgmr.msra.gmra.mxu3 %v3089_v58  ;;  %v2692_v34 = vld [vmem:[%s4046_s1 + $0x2b4] sm:$0xf0]  ;;  %v2422_v37 = vor.u32 %v2726_v27, %v2421_v25  ;;  %v2222_v38 = vor.u32 %v2676_v30, %v2221_v29  ;;  %v2349_v39 = vld [vmem:[%s4046_s1 + $0x330] sm:$0xf]  ;;  %v3178_v42 = vpack.c.b16 %v406_v28, %v406_v28  ;;  %v2213_v45 = vld [vmem:[%s4046_s1 + $0x220] sm:$0xf] }
  0x31   : > { %1402 = vmatpush.bf16.msrb.mxu3 %v2446_v59  ;;  %v2708_v40 = vld [vmem:[%s4046_s1 + $0x334] sm:$0xf0]  ;;  %v2413_v41 = vld [vmem:[%s4046_s1 + $0x3b0] sm:$0xf]  ;;  %v2286_v43 = vor.u32 %v2692_v34, %v2285_v33  ;;  %v2674_v46 = vld [vmem:[%s4046_s1 + $0x224] sm:$0xf0]  ;;  %v3189_v47 = vpack.c.b16 %v407_v31, %v407_v31  ;;  %v3191_v48 = vpack.c.b16 %v408_v32, %v408_v32  ;;  %v3199_v55 = vpack.c.b16 %v409_v36, %v409_v36 }
  0x32   : > { %1349 = vmatpush.bf16.msrb.mxu0 %v2246_v60  ;;  %v2724_v44 = vld [vmem:[%s4046_s1 + $0x3b4] sm:$0xf0]  ;;  %v2277_v50 = vld [vmem:[%s4046_s1 + $0x2a0] sm:$0xf]  ;;  %v2690_v51 = vld [vmem:[%s4046_s1 + $0x2a4] sm:$0xf0]  ;;  %v2350_v52 = vor.u32 %v2708_v40, %v2349_v39  ;;  %v2214_v57 = vor.u32 %v2674_v46, %v2213_v45 }
  0x33   : > { %1367 = vmatpush.bf16.msrb.mxu1 %v2310_v0  ;;  %v2414_v56 = vor.u32 %v2724_v44, %v2413_v41  ;;  %v2341_v59 = vld [vmem:[%s4046_s1 + $0x320] sm:$0xf]  ;;  %v2706_v60 = vld [vmem:[%s4046_s1 + $0x324] sm:$0xf0]  ;;  %v2278_v62 = vor.u32 %v2690_v51, %v2277_v50  ;;  %v2205_v0 = vld [vmem:[%s4046_s1 + $0x210] sm:$0xf] }
  0x34   : > { %1385 = vmatpush.bf16.msrb.mxu2 %v2374_v6  ;;  %v2405_v61 = vld [vmem:[%s4046_s1 + $0x3a0] sm:$0xf]  ;;  %v2722_v63 = vld [vmem:[%s4046_s1 + $0x3a4] sm:$0xf0]  ;;  %v2672_v1 = vld [vmem:[%s4046_s1 + $0x214] sm:$0xf0]  ;;  %v2342_v4 = vor.u32 %v2706_v60, %v2341_v59 }
  0x35   : > { %1403 = vmatpush.bf16.msrb.mxu3 %v2438_v7  ;;  %v2269_v2 = vld [vmem:[%s4046_s1 + $0x290] sm:$0xf]  ;;  %v2688_v3 = vld [vmem:[%s4046_s1 + $0x294] sm:$0xf0]  ;;  %v2406_v7 = vor.u32 %v2722_v63, %v2405_v61  ;;  %v2197_v11 = vld [vmem:[%s4046_s1 + $0x200] sm:$0xf] }
  0x36   : > { %1350 = vmatpush.bf16.msrb.mxu0 %v2238_v8  ;;  %v2333_v5 = vld [vmem:[%s4046_s1 + $0x310] sm:$0xf]  ;;  %v2704_v6 = vld [vmem:[%s4046_s1 + $0x314] sm:$0xf0]  ;;  %v2206_v8 = vor.u32 %v2672_v1, %v2205_v0  ;;  %v2670_v13 = vld [vmem:[%s4046_s1 + $0x204] sm:$0xf0] }
  0x37   : > { %1368 = vmatpush.bf16.msrb.mxu1 %v2302_v12  ;;  %v2397_v9 = vld [vmem:[%s4046_s1 + $0x390] sm:$0xf]  ;;  %v2720_v10 = vld [vmem:[%s4046_s1 + $0x394] sm:$0xf0]  ;;  %v2270_v12 = vor.u32 %v2688_v3, %v2269_v2  ;;  %v2261_v14 = vld [vmem:[%s4046_s1 + $0x280] sm:$0xf]  ;;  %v2198_v24 = vor.u32 %v2670_v13, %v2197_v11 }
  0x38   : > { %1386 = vmatpush.bf16.msrb.mxu2 %v2366_v19  ;;  %v2686_v15 = vld [vmem:[%s4046_s1 + $0x284] sm:$0xf0]  ;;  %v2325_v16 = vld [vmem:[%s4046_s1 + $0x300] sm:$0xf]  ;;  %v2509_v17 = vld [vmem:[%s4046_s1 + $0x470] sm:$0xf]  ;;  %v2334_v19 = vor.u32 %v2704_v6, %v2333_v5  ;;  %v2398_v23 = vor.u32 %v2720_v10, %v2397_v9 }
  0x39   : > { %1404 = vmatpush.bf16.msrb.mxu3 %v2430_v21  ;;  %v2748_v18 = vld [vmem:[%s4046_s1 + $0x474] sm:$0xf0]  ;;  %v2702_v20 = vld [vmem:[%s4046_s1 + $0x304] sm:$0xf0]  ;;  %v2573_v21 = vld [vmem:[%s4046_s1 + $0x4f0] sm:$0xf]  ;;  %v2262_v28 = vor.u32 %v2686_v15, %v2261_v14 }
  0x3a   : > { %1351 = vmatpush.bf16.msrb.mxu0 %v2230_v22  ;;  %v2764_v22 = vld [vmem:[%s4046_s1 + $0x4f4] sm:$0xf0]  ;;  %v2389_v25 = vld [vmem:[%s4046_s1 + $0x380] sm:$0xf]  ;;  %v1913_v27 = vld [vmem:[%s3064_s11 + $0x10] sm:$0xf]  ;;  %v2510_v32 = vor.u32 %v2748_v18, %v2509_v17 }
  0x3b   : > { %1369 = vmatpush.bf16.msrb.mxu1 %v2294_v26  ;;  %v2718_v26 = vld [vmem:[%s4046_s1 + $0x384] sm:$0xf0]  ;;  %v2601_v29 = vld [vmem:[%s3064_s11 + $0x38] sm:$0xf0]  ;;  %v2596_v30 = vld [vmem:[%s3064_s11 + $0x14] sm:$0xf]  ;;  %v2574_v34 = vor.u32 %v2764_v22, %v2573_v21 }
  0x3c   : > { %1387 = vmatpush.bf16.msrb.mxu2 %v2358_v35  ;;  %v1915_v31 = vld [vmem:[%s3064_s11 + $0x3c] sm:$0xf0]  ;;  %v1921_v33 = vld [vmem:[%s3064_s11 + $0x18] sm:$0xf]  ;;  %v2619_v35 = vld [vmem:[%s4046_s1 + $0x74] sm:$0xf]  ;;  %v2390_v41 = vor.u32 %v2718_v26, %v2389_v25  ;;  %v3300_v46 = vor.u32 %v2601_v29, %v1913_v27 }
  0x3d   : > { %1405 = vmatpush.bf16.msrb.mxu3 %v2422_v37  ;;  %1289 = vmatmul.bf16.gmra.mxu0 %v3178_v42  ;;  %v1999_v36 = vld [vmem:[%s4046_s1 + $0x78] sm:$0xf0]  ;;  %v2326_v37 = vor.u32 %v2702_v20, %v2325_v16  ;;  %v1923_v40 = vld [vmem:[%s3064_s11 + $0x44] sm:$0xf0]  ;;  %v2565_v45 = vld [vmem:[%s4046_s1 + $0x4e0] sm:$0xf] }
  0x3e   : > { %1352 = vmatpush.bf16.msrb.mxu0 %v2222_v38  ;;  %1307 = vmatmul.bf16.gmra.mxu1 %v3189_v47  ;;  %v2602_v38 = vld [vmem:[%s3064_s11 + $0x40] sm:$0xf0]  ;;  %v2597_v39 = vld [vmem:[%s3064_s11 + $0x1c] sm:$0xf]  ;;  %v2746_v44 = vld [vmem:[%s4046_s1 + $0x464] sm:$0xf0]  ;;  %v2002_v50 = vor.u32 %v2619_v35, %v1999_v36 }
  0x3f   : > { %1370 = vmatpush.bf16.msrb.mxu1 %v2286_v43  ;;  %1325 = vmatmul.bf16.gmra.mxu2 %v3191_v48  ;;  %v2501_v43 = vld [vmem:[%s4046_s1 + $0x460] sm:$0xf]  ;;  %v2762_v51 = vld [vmem:[%s4046_s1 + $0x4e4] sm:$0xf0]  ;;  %v3313_v59 = vor.u32 %v2602_v38, %v1921_v33  ;;  %v2617_v60 = vld [vmem:[%s4046_s1 + $0x64] sm:$0xf]  ;;  %v3321_v63 = vor.u32 %v2597_v39, %v1923_v40 }
  0x40   : > { %1388 = vmatpush.bf16.msrb.mxu2 %v2350_v52  ;;  %1343 = vmatmul.bf16.gmra.mxu3 %v3199_v55  ;;  %v2581_v52 = vld [vmem:[%s4046_s1 + $0x500] sm:$0xf]  ;;  %v1991_v61 = vld [vmem:[%s4046_s1 + $0x68] sm:$0xf0]  ;;  %v2502_v0 = vor.u32 %v2746_v44, %v2501_v43  ;;  %v2566_v1 = vor.u32 %v2762_v51, %v2565_v45  ;;  %v2493_v2 = vld [vmem:[%s4046_s1 + $0x450] sm:$0xf] }
  0x41   : > { %1406 = vmatpush.bf16.msrb.mxu3 %v2414_v56  ;;  %v2766_v56 = vld [vmem:[%s4046_s1 + $0x504] sm:$0xf0]  ;;  %v2744_v3 = vld [vmem:[%s4046_s1 + $0x454] sm:$0xf0]  ;;  %v2557_v5 = vld [vmem:[%s4046_s1 + $0x4d0] sm:$0xf] }
  0x42   : > { %1353 = vmatpush.bf16.msrb.mxu0 %v2214_v57  ;;  %v3311_v57 = vor.u32 %v2596_v30, %v1915_v31  ;;  %v2760_v6 = vld [vmem:[%s4046_s1 + $0x4d4] sm:$0xf0]  ;;  %v2494_v9 = vor.u32 %v2744_v3, %v2493_v2  ;;  %v2485_v11 = vld [vmem:[%s4046_s1 + $0x440] sm:$0xf]  ;;  %v2758_v15 = vld [vmem:[%s4046_s1 + $0x4c4] sm:$0xf0] }
  0x43   : > { %1371 = vmatpush.bf16.msrb.mxu1 %v2278_v62  ;;  %v2582_v62 = vor.u32 %v2766_v56, %v2581_v52  ;;  %v2558_v10 = vor.u32 %v2760_v6, %v2557_v5  ;;  %v2549_v13 = vld [vmem:[%s4046_s1 + $0x4c0] sm:$0xf]  ;;  %v2613_v16 = vld [vmem:[%s4046_s1 + $0x44] sm:$0xf]  ;;  %v1975_v17 = vld [vmem:[%s4046_s1 + $0x48] sm:$0xf0] }
  0x44   : > { %1389 = vmatpush.bf16.msrb.mxu2 %v2342_v4  ;;  %v1994_v4 = vor.u32 %v2617_v60, %v1991_v61  ;;  %v194_v18 = vld [vmem:[%s3064_s11 + $0x68] sm:$0xff]  ;;  %v2191_v20 = vld [vmem:[%s4046_s1 + $0x1f8] sm:$0xf0]  ;;  %v195_v22 = vld [vmem:[%s3064_s11 + $0x70] sm:$0xff] }
  0x45   : > { %1407 = vmatpush.bf16.msrb.mxu3 %v2406_v7  ;;  %v2615_v7 = vld [vmem:[%s4046_s1 + $0x54] sm:$0xf]  ;;  %v2477_v25 = vld [vmem:[%s4046_s1 + $0x430] sm:$0xf]  ;;  %v2740_v26 = vld [vmem:[%s4046_s1 + $0x434] sm:$0xf0]  ;;  %v410_v29 = vunpack.c.l.b16 %v194_v18  ;;  %v411_v33 = vunpack.c.h.b16 %v194_v18  ;;  %v413_v39 = vunpack.c.h.b16 %v195_v22 }
  0x46   : > { %1354 = vmatpush.bf16.msrb.mxu0 %v2206_v8  ;;  %v1983_v8 = vld [vmem:[%s4046_s1 + $0x58] sm:$0xf0]  ;;  %v2665_v27 = vld [vmem:[%s4046_s1 + $0x1e4] sm:$0xf]  ;;  %v2541_v30 = vld [vmem:[%s4046_s1 + $0x4b0] sm:$0xf]  ;;  %v2478_v38 = vor.u32 %v2740_v26, %v2477_v25 }
  0x47   : > { %1372 = vmatpush.bf16.msrb.mxu1 %v2270_v12  ;;  %v2742_v12 = vld [vmem:[%s4046_s1 + $0x444] sm:$0xf0]  ;;  %v1986_v14 = vor.u32 %v2615_v7, %v1983_v8  ;;  %v2756_v31 = vld [vmem:[%s4046_s1 + $0x4b4] sm:$0xf0]  ;;  %v2611_v35 = vld [vmem:[%s4046_s1 + $0x34] sm:$0xf]  ;;  %v3404_v45 = vpack.c.b16 %v410_v29, %v410_v29  ;;  %v3415_v60 = vpack.c.b16 %v411_v33, %v411_v33 }
  0x48   : > { %1390 = vmatpush.bf16.msrb.mxu2 %v2334_v19  ;;  %v2667_v19 = vld [vmem:[%s4046_s1 + $0x1f4] sm:$0xf]  ;;  %v2486_v21 = vor.u32 %v2742_v12, %v2485_v11  ;;  %v1967_v36 = vld [vmem:[%s4046_s1 + $0x38] sm:$0xf0]  ;;  %v2542_v40 = vor.u32 %v2756_v31, %v2541_v30  ;;  %v2738_v43 = vld [vmem:[%s4046_s1 + $0x424] sm:$0xf0] }
  0x49   : > { %1408 = vmatpush.bf16.msrb.mxu3 %v2398_v23  ;;  %v2194_v23 = vor.u32 %v2667_v19, %v2191_v20  ;;  %v2533_v44 = vld [vmem:[%s4046_s1 + $0x4a0] sm:$0xf]  ;;  %v2754_v51 = vld [vmem:[%s4046_s1 + $0x4a4] sm:$0xf0]  ;;  %v2663_v52 = vld [vmem:[%s4046_s1 + $0x1d4] sm:$0xf] }
  0x4a   : > { %1355 = vmatpush.bf16.msrb.mxu0 %v2198_v24  ;;  %v2550_v24 = vor.u32 %v2758_v15, %v2549_v13  ;;  %v2175_v56 = vld [vmem:[%s4046_s1 + $0x1d8] sm:$0xf0]  ;;  %v2534_v3 = vor.u32 %v2754_v51, %v2533_v44  ;;  %v2736_v5 = vld [vmem:[%s4046_s1 + $0x414] sm:$0xf0]  ;;  %v2525_v6 = vld [vmem:[%s4046_s1 + $0x490] sm:$0xf] }
  0x4b   : > { %1373 = vmatpush.bf16.msrb.mxu1 %v2262_v28  ;;  %v1978_v28 = vor.u32 %v2613_v16, %v1975_v17  ;;  %v2178_v7 = vor.u32 %v2663_v52, %v2175_v56  ;;  %v2167_v11 = vld [vmem:[%s4046_s1 + $0x1c8] sm:$0xf0]  ;;  %v2607_v12 = vld [vmem:[%s4046_s1 + $0x14] sm:$0xf]  ;;  %v1951_v13 = vld [vmem:[%s4046_s1 + $0x18] sm:$0xf0] }
  0x4c   : > { %1391 = vmatpush.bf16.msrb.mxu2 %v2326_v37  ;;  %v2453_v15 = vld [vmem:[%s4046_s1 + $0x400] sm:$0xf]  ;;  %v2734_v16 = vld [vmem:[%s4046_s1 + $0x404] sm:$0xf0]  ;;  %v2605_v20 = vld [vmem:[%s4046_s1 + $0x4] sm:$0xf] }
  0x4d   : > { %1409 = vmatpush.bf16.msrb.mxu3 %v2390_v41  ;;  %1356 = vmatmul.bf16.vlgmr.msrb.gmra.mxu0 %v3300_v46  ;;  %v2469_v41 = vld [vmem:[%s4046_s1 + $0x420] sm:$0xf]  ;;  %v2750_v19 = vld [vmem:[%s4046_s1 + $0x484] sm:$0xf0]  ;;  %v2063_v25 = vld [vmem:[%s4046_s1 + $0xf8] sm:$0xf0]  ;;  %v2454_v29 = vor.u32 %v2734_v16, %v2453_v15 }
  0x4e   : > { %1420 = vmatpush.bf16.msra.mxu0 %v2510_v32  ;;  %1374 = vmatmul.bf16.vlgmr.msrb.gmra.mxu1 %v3311_v57  ;;  %v2183_v32 = vld [vmem:[%s4046_s1 + $0x1e8] sm:$0xf0]  ;;  %v2470_v2 = vor.u32 %v2738_v43, %v2469_v41  ;;  %v2517_v18 = vld [vmem:[%s4046_s1 + $0x480] sm:$0xf]  ;;  %v2651_v26 = vld [vmem:[%s4046_s1 + $0x174] sm:$0xf] }
  0x4f   : > { %1438 = vmatpush.bf16.msra.mxu1 %v2574_v34  ;;  %1392 = vmatmul.bf16.vlgmr.msrb.gmra.mxu2 %v3313_v59  ;;  %v412_v34 = vunpack.c.l.b16 %v195_v22  ;;  %v2186_v37 = vor.u32 %v2665_v27, %v2183_v32  ;;  %v1954_v22 = vor.u32 %v2607_v12, %v1951_v13  ;;  %v2127_v27 = vld [vmem:[%s4046_s1 + $0x178] sm:$0xf0]  ;;  %v2659_v31 = vld [vmem:[%s4046_s1 + $0x1b4] sm:$0xf]  ;;  %v2518_v33 = vor.u32 %v2750_v19, %v2517_v18  ;;  %v2598_v41 = vld [vmem:[%s3064_s11 + $0x24] sm:$0xf] }
  0x50   : > { %1463 = vmatpush.bf16.msra.mxu2 %v2582_v62  ;;  %1410 = vmatmul.bf16.vlgmr.msrb.gmra.mxu3 %v3321_v63  ;;  %v2609_v62 = vld [vmem:[%s4046_s1 + $0x24] sm:$0xf]  ;;  %v2255_v30 = vld [vmem:[%s4046_s1 + $0x278] sm:$0xf0]  ;;  %v1931_v52 = vld [vmem:[%s3064_s11 + $0x4c] sm:$0xf0] }
  0x51   : > { %1474 = vmatpush.bf16.msra.mxu3 %v2002_v50  ;;  %v1970_v50 = vor.u32 %v2611_v35, %v1967_v36  ;;  %v3417_v61 = vpack.c.b16 %v412_v34, %v412_v34  ;;  %v2159_v32 = vld [vmem:[%s4046_s1 + $0x1b8] sm:$0xf0]  ;;  %v1929_v34 = vld [vmem:[%s3064_s11 + $0x20] sm:$0xf]  ;;  %v2649_v44 = vld [vmem:[%s4046_s1 + $0x164] sm:$0xf] }
  0x52   : > { %1421 = vmatpush.bf16.msra.mxu0 %v2502_v0  ;;  %v1959_v0 = vld [vmem:[%s4046_s1 + $0x28] sm:$0xf0]  ;;  %v2162_v51 = vor.u32 %v2659_v31, %v2159_v32  ;;  %v1937_v56 = vld [vmem:[%s3064_s11 + $0x28] sm:$0xf]  ;;  %v2647_v12 = vld [vmem:[%s4046_s1 + $0x154] sm:$0xf] }
  0x53   : > { %1439 = vmatpush.bf16.msra.mxu1 %v2566_v1  ;;  %v3425_v1 = vpack.c.b16 %v413_v39, %v413_v39  ;;  %v1962_v8 = vor.u32 %v2609_v62, %v1959_v0  ;;  %v2633_v39 = vld [vmem:[%s4046_s1 + $0xe4] sm:$0xf]  ;;  %v2604_v62 = vld [vmem:[%s3064_s11 + $0x50] sm:$0xf0]  ;;  %v2111_v13 = vld [vmem:[%s4046_s1 + $0x158] sm:$0xf0] }
  0x54   : > { %1528 = vmatpush.bf16.msrb.mxu2 %v2194_v23  ;;  %v1943_v23 = vld [vmem:[%s4046_s1 + $0x8] sm:$0xf0]  ;;  %v2655_v18 = vld [vmem:[%s4046_s1 + $0x194] sm:$0xf]  ;;  %v2143_v19 = vld [vmem:[%s4046_s1 + $0x198] sm:$0xf0] }
  0x55   : > { %1475 = vmatpush.bf16.msra.mxu3 %v1994_v4  ;;  %v2461_v4 = vld [vmem:[%s4046_s1 + $0x410] sm:$0xf]  ;;  %v1946_v36 = vor.u32 %v2605_v20, %v1943_v23  ;;  %v2114_v20 = vor.u32 %v2647_v12, %v2111_v13  ;;  %v2039_v23 = vld [vmem:[%s4046_s1 + $0xc8] sm:$0xf0]  ;;  %v196_v31 = vld [vmem:[%s3064_s11 + $0x78] sm:$0xff] }
  0x56   : > { %1422 = vmatpush.bf16.msra.mxu0 %v2494_v9  ;;  %v2752_v9 = vld [vmem:[%s4046_s1 + $0x494] sm:$0xf0]  ;;  %v2135_v32 = vld [vmem:[%s4046_s1 + $0x188] sm:$0xf0]  ;;  %v2673_v12 = vld [vmem:[%s4046_s1 + $0x224] sm:$0xf] }
  0x57   : > { %1440 = vmatpush.bf16.msra.mxu1 %v2558_v10  ;;  %v2661_v10 = vld [vmem:[%s4046_s1 + $0x1c4] sm:$0xf]  ;;  %v2526_v17 = vor.u32 %v2752_v9, %v2525_v6  ;;  %v2047_v9 = vld [vmem:[%s4046_s1 + $0xd8] sm:$0xf0] }
  0x58   : > { %1529 = vmatpush.bf16.msrb.mxu2 %v2186_v37  ;;  %v2603_v37 = vld [vmem:[%s3064_s11 + $0x48] sm:$0xf0]  ;;  %v2729_v13 = vld [vmem:[%s4046_s1 + $0x3e4] sm:$0xf] }
  0x59   : > { %1476 = vmatpush.bf16.msra.mxu3 %v1986_v14  ;;  %v2462_v14 = vor.u32 %v2736_v5, %v2461_v4  ;;  %v2151_v4 = vld [vmem:[%s4046_s1 + $0x1a8] sm:$0xf0]  ;;  %v3524_v5 = vor.u32 %v2603_v37, %v1929_v34  ;;  %v2627_v34 = vld [vmem:[%s4046_s1 + $0xb4] sm:$0xf]  ;;  %v2095_v37 = vld [vmem:[%s4046_s1 + $0x138] sm:$0xf0] }
  0x5a   : > { %1423 = vmatpush.bf16.msra.mxu0 %v2486_v21  ;;  %v2170_v21 = vor.u32 %v2661_v10, %v2167_v11  ;;  %v3535_v10 = vor.u32 %v2598_v41, %v1931_v52  ;;  %v3537_v11 = vor.u32 %v2604_v62, %v1937_v56  ;;  %v2223_v56 = vld [vmem:[%s4046_s1 + $0x238] sm:$0xf0]  ;;  %v2625_v62 = vld [vmem:[%s4046_s1 + $0xa4] sm:$0xf] }
  0x5b   : > { %1441 = vmatpush.bf16.msra.mxu1 %v2550_v24  ;;  %v2635_v24 = vld [vmem:[%s4046_s1 + $0xf4] sm:$0xf] }
  0x5c   : > { %1530 = vmatpush.bf16.msrb.mxu2 %v2178_v7  ;;  %v2066_v35 = vor.u32 %v2635_v24, %v2063_v25  ;;  %v2247_v7 = vld [vmem:[%s4046_s1 + $0x268] sm:$0xf0]  ;;  %v2645_v24 = vld [vmem:[%s4046_s1 + $0x144] sm:$0xf] }
  0x5d   : > { %1477 = vmatpush.bf16.msra.mxu3 %v1978_v28  ;;  %1361 = vmatmul.bf16.gmra.mxu0 %v3404_v45  ;;  %v2683_v28 = vld [vmem:[%s4046_s1 + $0x274] sm:$0xf]  ;;  %v2103_v25 = vld [vmem:[%s4046_s1 + $0x148] sm:$0xf0] }
  0x5e   : > { %1424 = vmatpush.bf16.msra.mxu0 %v2478_v38  ;;  %1379 = vmatmul.bf16.gmra.mxu1 %v3415_v60  ;;  %v2130_v38 = vor.u32 %v2651_v26, %v2127_v27  ;;  %v2258_v43 = vor.u32 %v2683_v28, %v2255_v30  ;;  %v2677_v26 = vld [vmem:[%s4046_s1 + $0x244] sm:$0xf]  ;;  %v2231_v27 = vld [vmem:[%s4046_s1 + $0x248] sm:$0xf0]  ;;  %v2146_v28 = vor.u32 %v2655_v18, %v2143_v19  ;;  %v2623_v18 = vld [vmem:[%s4046_s1 + $0x94] sm:$0xf] }
  0x5f   : > { %1442 = vmatpush.bf16.msra.mxu1 %v2542_v40  ;;  %1397 = vmatmul.bf16.gmra.mxu2 %v3417_v61  ;;  %v2055_v40 = vld [vmem:[%s4046_s1 + $0xe8] sm:$0xf0]  ;;  %v2015_v19 = vld [vmem:[%s4046_s1 + $0x98] sm:$0xf0] }
  0x60   : > { %1415 = vmatmul.bf16.gmra.mxu3 %v3425_v1  ;;  %1531 = vmatpush.bf16.msrb.mxu2 %v2170_v21  ;;  %v2058_v0 = vor.u32 %v2633_v39, %v2055_v40  ;;  %v2239_v21 = vld [vmem:[%s4046_s1 + $0x258] sm:$0xf0]  ;;  %v197_v40 = vld [vmem:[%s3064_s11 + $0x80] sm:$0xf] }
  0x61   : > { %1478 = vmatpush.bf16.msra.mxu3 %v1970_v50  ;;  %v2119_v50 = vld [vmem:[%s4046_s1 + $0x168] sm:$0xf0]  ;;  %v2447_v39 = vld [vmem:[%s4046_s1 + $0x3f8] sm:$0xf0] }
  0x62   : > { %1425 = vmatpush.bf16.msra.mxu0 %v2470_v2  ;;  %v2681_v2 = vld [vmem:[%s4046_s1 + $0x264] sm:$0xf]  ;;  %v2122_v6 = vor.u32 %v2649_v44, %v2119_v50  ;;  %v2675_v50 = vld [vmem:[%s4046_s1 + $0x234] sm:$0xf] }
  0x63   : > { %1443 = vmatpush.bf16.msra.mxu1 %v2534_v3  ;;  %v2657_v3 = vld [vmem:[%s4046_s1 + $0x1a4] sm:$0xf]  ;;  %v2250_v15 = vor.u32 %v2681_v2, %v2247_v7  ;;  %v2087_v7 = vld [vmem:[%s4046_s1 + $0x128] sm:$0xf0] }
  0x64   : > { %1532 = vmatpush.bf16.msrb.mxu2 %v2162_v51  ;;  %v414_v51 = vunpack.c.l.b16 %v196_v31 }
  0x65   : > { %1479 = vmatpush.bf16.msra.mxu3 %v1962_v8  ;;  %v2631_v8 = vld [vmem:[%s4046_s1 + $0xd4] sm:$0xf] }
  0x66   : > { %1426 = vmatpush.bf16.msra.mxu0 %v2462_v14  ;;  %v2154_v14 = vor.u32 %v2657_v3, %v2151_v4  ;;  %v2050_v16 = vor.u32 %v2631_v8, %v2047_v9  ;;  %v415_v3 = vunpack.c.h.b16 %v196_v31  ;;  %v416_v4 = vunpack.c.l.b16 %v197_v40 }
  0x67   : > { %1444 = vmatpush.bf16.msra.mxu1 %v2526_v17  ;;  %v2679_v17 = vld [vmem:[%s4046_s1 + $0x254] sm:$0xf]  ;;  %v2226_v8 = vor.u32 %v2675_v50, %v2223_v56  ;;  %v2669_v50 = vld [vmem:[%s4046_s1 + $0x204] sm:$0xf] }
  0x68   : > { %1533 = vmatpush.bf16.msrb.mxu2 %v2154_v14  ;;  %v2439_v14 = vld [vmem:[%s4046_s1 + $0x3e8] sm:$0xf0]  ;;  %v2747_v56 = vld [vmem:[%s4046_s1 + $0x474] sm:$0xf] }
  0x69   : > { %1480 = vmatpush.bf16.msra.mxu3 %v1954_v22  ;;  %v2629_v22 = vld [vmem:[%s4046_s1 + $0xc4] sm:$0xf] }
  0x6a   : > { %1427 = vmatpush.bf16.msra.mxu0 %v2454_v29  ;;  %v2242_v29 = vor.u32 %v2679_v17, %v2239_v21  ;;  %v2042_v30 = vor.u32 %v2629_v22, %v2039_v23  ;;  %v2215_v17 = vld [vmem:[%s4046_s1 + $0x228] sm:$0xf0]  ;;  %v3646_v21 = vpack.c.b16 %v416_v4, %v416_v4  ;;  %v2639_v22 = vld [vmem:[%s4046_s1 + $0x114] sm:$0xf]  ;;  %v2079_v23 = vld [vmem:[%s4046_s1 + $0x118] sm:$0xf0] }
  0x6b   : > { %1445 = vmatpush.bf16.msra.mxu1 %v2518_v33  ;;  %v2106_v33 = vor.u32 %v2645_v24, %v2103_v25  ;;  %v2671_v24 = vld [vmem:[%s4046_s1 + $0x214] sm:$0xf]  ;;  %v2442_v25 = vor.u32 %v2729_v13, %v2439_v14  ;;  %v2082_v31 = vor.u32 %v2639_v22, %v2079_v23  ;;  %v2713_v4 = vld [vmem:[%s4046_s1 + $0x364] sm:$0xf]  ;;  %v2303_v23 = vld [vmem:[%s4046_s1 + $0x2d8] sm:$0xf0] }
  0x6c   : > { %1534 = vmatpush.bf16.msrb.mxu2 %v2146_v28  ;;  %v2207_v28 = vld [vmem:[%s4046_s1 + $0x218] sm:$0xf0]  ;;  %v2695_v22 = vld [vmem:[%s4046_s1 + $0x2d4] sm:$0xf] }
  0x6d   : > { %1481 = vmatpush.bf16.msra.mxu3 %v1946_v36  ;;  %1428 = vmatmul.bf16.vlgmr.msra.gmra.mxu0 %v3524_v5  ;;  %v2643_v36 = vld [vmem:[%s4046_s1 + $0x134] sm:$0xf]  ;;  %v2210_v40 = vor.u32 %v2671_v24, %v2207_v28  ;;  %v2407_v28 = vld [vmem:[%s4046_s1 + $0x3a8] sm:$0xf0] }
  0x6e   : > { %1492 = vmatpush.bf16.msrb.mxu0 %v2066_v35  ;;  %1446 = vmatmul.bf16.vlgmr.msra.gmra.mxu1 %v3535_v10  ;;  %v2031_v35 = vld [vmem:[%s4046_s1 + $0xb8] sm:$0xf0]  ;;  %v2098_v52 = vor.u32 %v2643_v36, %v2095_v37  ;;  %v2715_v37 = vld [vmem:[%s4046_s1 + $0x374] sm:$0xf] }
  0x6f   : > { %1510 = vmatpush.bf16.msrb.mxu1 %v2130_v38  ;;  %2587 = vmatmul.msk.bf16.vlgmr.msra.gmra.mxu2 %vm1269_vm0, %v3537_v11  ;;  %v2731_v38 = vld [vmem:[%s4046_s1 + $0x3f4] sm:$0xf]  ;;  %v2034_v44 = vor.u32 %v2627_v34, %v2031_v35  ;;  %v2071_v34 = vld [vmem:[%s4046_s1 + $0x108] sm:$0xf0]  ;;  %v2319_v36 = vld [vmem:[%s4046_s1 + $0x2f8] sm:$0xf0] }
  0x70   : > { %1482 = vmatmul.bf16.vlgmr.msra.gmra.mxu3 %v3078_v49  ;;  %v2653_v49 = vld [vmem:[%s4046_s1 + $0x184] sm:$0xf]  ;;  %v2450_v2 = vor.u32 %v2731_v38, %v2447_v39  ;;  %v2699_v35 = vld [vmem:[%s4046_s1 + $0x2f4] sm:$0xf]  ;;  %v2383_v38 = vld [vmem:[%s4046_s1 + $0x378] sm:$0xf0] }
  0x71   : > { %1546 = vmatpush.bf16.msrb.mxu3 %v2258_v43  ;;  %v2138_v41 = vor.u32 %v2653_v49, %v2135_v32  ;;  %v2234_v43 = vor.u32 %v2677_v26, %v2231_v27  ;;  %v2218_v26 = vor.u32 %v2673_v12, %v2215_v17  ;;  %v2018_v27 = vor.u32 %v2623_v18, %v2015_v19  ;;  %v2621_v49 = vld [vmem:[%s4046_s1 + $0x84] sm:$0xf]  ;;  %v2007_v32 = vld [vmem:[%s4046_s1 + $0x88] sm:$0xf0]  ;;  %v2415_v12 = vld [vmem:[%s4046_s1 + $0x3b8] sm:$0xf0] }
  0x72   : > { %1493 = vmatpush.bf16.msrb.mxu0 %v2058_v0  ;;  %v2023_v0 = vld [vmem:[%s4046_s1 + $0xa8] sm:$0xf0]  ;;  %v2745_v17 = vld [vmem:[%s4046_s1 + $0x464] sm:$0xf]  ;;  %v2711_v24 = vld [vmem:[%s4046_s1 + $0x354] sm:$0xf] }
  0x73   : > { %1511 = vmatpush.bf16.msrb.mxu1 %v2122_v6  ;;  %v2641_v6 = vld [vmem:[%s4046_s1 + $0x124] sm:$0xf]  ;;  %1535 = vmatpush.bf16.msrb.mxu2 %v2138_v41  ;;  %v2026_v9 = vor.u32 %v2625_v62, %v2023_v0  ;;  %v2010_v41 = vor.u32 %v2621_v49, %v2007_v32  ;;  %v2386_v62 = vor.u32 %v2715_v37, %v2383_v38  ;;  %v2511_v0 = vld [vmem:[%s4046_s1 + $0x478] sm:$0xf0]  ;;  %v2503_v18 = vld [vmem:[%s4046_s1 + $0x468] sm:$0xf0] }
  0x74   : > { %v2514_v13 = vor.u32 %v2747_v56, %v2511_v0  ;;  %v2693_v32 = vld [vmem:[%s4046_s1 + $0x2c4] sm:$0xf]  ;;  %v2359_v37 = vld [vmem:[%s4046_s1 + $0x348] sm:$0xf0]  ;;  %v2719_v38 = vld [vmem:[%s4046_s1 + $0x394] sm:$0xf] }
  0x75   : > { %1547 = vmatpush.bf16.msrb.mxu3 %v2250_v15  ;;  %v3633_v15 = vpack.c.b16 %v414_v51, %v414_v51  ;;  %v2199_v51 = vld [vmem:[%s4046_s1 + $0x208] sm:$0xf0]  ;;  %v2763_v0 = vld [vmem:[%s4046_s1 + $0x4f4] sm:$0xf] }
  0x76   : > { %1494 = vmatpush.bf16.msrb.mxu0 %v2050_v16  ;;  %v2090_v16 = vor.u32 %v2641_v6, %v2087_v7  ;;  %v2375_v6 = vld [vmem:[%s4046_s1 + $0x368] sm:$0xf0] }
  0x77   : > { %1512 = vmatpush.bf16.msrb.mxu1 %v2114_v20  ;;  %1600 = vmatpush.bf16.msra.mxu2 %v2450_v2  ;;  %v3644_v20 = vpack.c.b16 %v415_v3, %v415_v3  ;;  %v2697_v2 = vld [vmem:[%s4046_s1 + $0x2e4] sm:$0xf]  ;;  %v2311_v3 = vld [vmem:[%s4046_s1 + $0x2e8] sm:$0xf0] }
  0x78   : > { %v2314_v14 = vor.u32 %v2697_v2, %v2311_v3  ;;  %v2391_v56 = vld [vmem:[%s4046_s1 + $0x388] sm:$0xf0]  ;;  %v2575_v2 = vld [vmem:[%s4046_s1 + $0x4f8] sm:$0xf0] }
  0x79   : > { %1548 = vmatpush.bf16.msrb.mxu3 %v2242_v29  ;;  %v2727_v29 = vld [vmem:[%s4046_s1 + $0x3d4] sm:$0xf] }
  0x7a   : > { %1495 = vmatpush.bf16.msrb.mxu0 %v2042_v30  ;;  %v2431_v30 = vld [vmem:[%s4046_s1 + $0x3d8] sm:$0xf0] }
  0x7b   : > { %1513 = vmatpush.bf16.msrb.mxu1 %v2106_v33  ;;  %v2637_v33 = vld [vmem:[%s4046_s1 + $0x104] sm:$0xf]  ;;  %1601 = vmatpush.bf16.msra.mxu2 %v2442_v25  ;;  %v2434_v39 = vor.u32 %v2727_v29, %v2431_v30  ;;  %v2506_v25 = vor.u32 %v2745_v17, %v2503_v18  ;;  %v2743_v29 = vld [vmem:[%s4046_s1 + $0x454] sm:$0xf]  ;;  %v2495_v30 = vld [vmem:[%s4046_s1 + $0x458] sm:$0xf0] }
  0x7c   : > { %v2471_v17 = vld [vmem:[%s4046_s1 + $0x428] sm:$0xf0] }
  0x7d   : > { %1549 = vmatpush.bf16.msrb.mxu3 %v2234_v43  ;;  %1433 = vmatmul.bf16.gmra.mxu0 %v3633_v15  ;;  %v2725_v43 = vld [vmem:[%s4046_s1 + $0x3c4] sm:$0xf] }
  0x7e   : > { %1496 = vmatpush.bf16.msrb.mxu0 %v2034_v44  ;;  %1451 = vmatmul.bf16.gmra.mxu1 %v3644_v20  ;;  %v2074_v44 = vor.u32 %v2637_v33, %v2071_v34  ;;  %v2295_v33 = vld [vmem:[%s4046_s1 + $0x2c8] sm:$0xf0]  ;;  %v2709_v34 = vld [vmem:[%s4046_s1 + $0x344] sm:$0xf] }
  0x7f   : > { %1514 = vmatpush.bf16.msrb.mxu1 %v2098_v52  ;;  %2588 = vmatmul.msk.bf16.gmra.mxu2 %vm1269_vm0, %v3646_v21  ;;  %v2322_v52 = vor.u32 %v2699_v35, %v2319_v36  ;;  %v2498_v36 = vor.u32 %v2743_v29, %v2495_v30  ;;  %v2735_v29 = vld [vmem:[%s4046_s1 + $0x414] sm:$0xf]  ;;  %v2463_v30 = vld [vmem:[%s4046_s1 + $0x418] sm:$0xf0] }
  0x80   : > { %1487 = vmatmul.bf16.gmra.mxu3 %v3178_v42  ;;  %v2423_v42 = vld [vmem:[%s4046_s1 + $0x3c8] sm:$0xf0]  ;;  %1602 = vmatpush.bf16.msra.mxu2 %v2434_v39  ;;  %v2399_v39 = vld [vmem:[%s4046_s1 + $0x398] sm:$0xf0] }
  0x81   : > { %1550 = vmatpush.bf16.msrb.mxu3 %v2226_v8  ;;  %v2426_v7 = vor.u32 %v2725_v43, %v2423_v42  ;;  %v2202_v8 = vor.u32 %v2669_v50, %v2199_v51  ;;  %v2691_v43 = vld [vmem:[%s4046_s1 + $0x2b4] sm:$0xf] }
  0x82   : > { %1497 = vmatpush.bf16.msrb.mxu0 %v2026_v9  ;;  %v2723_v9 = vld [vmem:[%s4046_s1 + $0x3b4] sm:$0xf] }
  0x83   : > { %1515 = vmatpush.bf16.msrb.mxu1 %v2090_v16  ;;  %v2378_v16 = vor.u32 %v2713_v4, %v2375_v6  ;;  %v2418_v19 = vor.u32 %v2723_v9, %v2415_v12  ;;  %v2707_v42 = vld [vmem:[%s4046_s1 + $0x334] sm:$0xf]  ;;  %v2689_v6 = vld [vmem:[%s4046_s1 + $0x2a4] sm:$0xf] }
  0x84   : > { %1603 = vmatpush.bf16.msra.mxu2 %v2426_v7  ;;  %v2739_v51 = vld [vmem:[%s4046_s1 + $0x434] sm:$0xf]  ;;  %v2279_v7 = vld [vmem:[%s4046_s1 + $0x2a8] sm:$0xf0]  ;;  %v2705_v12 = vld [vmem:[%s4046_s1 + $0x324] sm:$0xf] }
  0x85   : > { %1551 = vmatpush.bf16.msrb.mxu3 %v2218_v26  ;;  %v2367_v26 = vld [vmem:[%s4046_s1 + $0x358] sm:$0xf0]  ;;  %v2282_v18 = vor.u32 %v2689_v6, %v2279_v7 }
  0x86   : > { %1498 = vmatpush.bf16.msrb.mxu0 %v2018_v27  ;;  %v2721_v27 = vld [vmem:[%s4046_s1 + $0x3a4] sm:$0xf]  ;;  %v2370_v49 = vor.u32 %v2711_v24, %v2367_v26  ;;  %v2703_v24 = vld [vmem:[%s4046_s1 + $0x314] sm:$0xf]  ;;  %v2335_v26 = vld [vmem:[%s4046_s1 + $0x318] sm:$0xf0] }
  0x87   : > { %1516 = vmatpush.bf16.msrb.mxu1 %v2082_v31  ;;  %v2306_v31 = vor.u32 %v2695_v22, %v2303_v23  ;;  %v2410_v35 = vor.u32 %v2721_v27, %v2407_v28  ;;  %v2687_v22 = vld [vmem:[%s4046_s1 + $0x294] sm:$0xf]  ;;  %v2271_v23 = vld [vmem:[%s4046_s1 + $0x298] sm:$0xf0]  ;;  %v2761_v27 = vld [vmem:[%s4046_s1 + $0x4e4] sm:$0xf] }
  0x88   : > { %1604 = vmatpush.bf16.msra.mxu2 %v2418_v19  ;;  %v2567_v28 = vld [vmem:[%s4046_s1 + $0x4e8] sm:$0xf0] }
  0x89   : > { %1552 = vmatpush.bf16.msrb.mxu3 %v2210_v40  ;;  %v2487_v40 = vld [vmem:[%s4046_s1 + $0x448] sm:$0xf0] }
  0x8a   : > { %1499 = vmatpush.bf16.msrb.mxu0 %v2010_v41  ;;  %v2298_v41 = vor.u32 %v2693_v32, %v2295_v33  ;;  %v2685_v32 = vld [vmem:[%s4046_s1 + $0x284] sm:$0xf]  ;;  %v2263_v33 = vld [vmem:[%s4046_s1 + $0x288] sm:$0xf0] }
  0x8b   : > { %1517 = vmatpush.bf16.msrb.mxu1 %v2074_v44  ;;  %v2402_v44 = vor.u32 %v2719_v38, %v2399_v39  ;;  %v2733_v38 = vld [vmem:[%s4046_s1 + $0x404] sm:$0xf] }
  0x8c   : > { %1605 = vmatpush.bf16.msra.mxu2 %v2410_v35  ;;  %v2466_v35 = vor.u32 %v2735_v29, %v2463_v30  ;;  %v2765_v39 = vld [vmem:[%s4046_s1 + $0x504] sm:$0xf] }
  0x8d   : > { %1553 = vmatpush.bf16.msrb.mxu3 %v2202_v8  ;;  %1500 = vmatmul.bf16.vlgmr.msrb.gmra.mxu0 %v3083_v53  ;;  %v2741_v53 = vld [vmem:[%s4046_s1 + $0x444] sm:$0xf] }
  0x8e   : > { %1564 = vmatpush.bf16.msra.mxu0 %v2322_v52  ;;  %1518 = vmatmul.bf16.vlgmr.msrb.gmra.mxu1 %v3085_v54  ;;  %v2362_v54 = vor.u32 %v2709_v34, %v2359_v37  ;;  %v2490_v50 = vor.u32 %v2741_v53, %v2487_v40  ;;  %v2717_v52 = vld [vmem:[%s4046_s1 + $0x384] sm:$0xf]  ;;  %v2570_v34 = vor.u32 %v2761_v27, %v2567_v28  ;;  %v2327_v37 = vld [vmem:[%s4046_s1 + $0x308] sm:$0xf0]  ;;  %v3936_v27 = vld [vmem:[%s4047_s2] sm:$0x3] }
  0x8f   : > { %1582 = vmatpush.bf16.msra.mxu1 %v2386_v62  ;;  %1536 = vmatmul.bf16.vlgmr.msrb.gmra.mxu2 %v3089_v58  ;;  %v2287_v58 = vld [vmem:[%s4046_s1 + $0x2b8] sm:$0xf0]  ;;  %v2394_v8 = vor.u32 %v2717_v52, %v2391_v56  ;;  %v2583_v53 = vld [vmem:[%s4046_s1 + $0x508] sm:$0xf0]  ;;  %v2266_v40 = vor.u32 %v2685_v32, %v2263_v33 }
  0x90   : > { %1554 = vmatmul.bf16.vlgmr.msrb.gmra.mxu3 %v3300_v46  ;;  %v2351_v46 = vld [vmem:[%s4046_s1 + $0x338] sm:$0xf0]  ;;  %v2290_v3 = vor.u32 %v2691_v43, %v2287_v58  ;;  %1606 = vmatpush.bf16.msra.mxu2 %v2402_v44  ;;  %v2755_v44 = vld [vmem:[%s4046_s1 + $0x4b4] sm:$0xf] }
  0x91   : > { %1618 = vmatpush.bf16.msra.mxu3 %v2514_v13  ;;  %v2479_v62 = vld [vmem:[%s4046_s1 + $0x438] sm:$0xf0]  ;;  %v2354_v4 = vor.u32 %v2707_v42, %v2351_v46  ;;  %v2343_v13 = vld [vmem:[%s4046_s1 + $0x328] sm:$0xf0] }
  0x92   : > { %1565 = vmatpush.bf16.msra.mxu0 %v2314_v14  ;;  %v2482_v9 = vor.u32 %v2739_v51, %v2479_v62  ;;  %v2578_v14 = vor.u32 %v2763_v0, %v2575_v2  ;;  %v2346_v19 = vor.u32 %v2705_v12, %v2343_v13  ;;  %v2551_v42 = vld [vmem:[%s4046_s1 + $0x4c8] sm:$0xf0]  ;;  %v2753_v62 = vld [vmem:[%s4046_s1 + $0x4a4] sm:$0xf] }
  0x93   : > { %1583 = vmatpush.bf16.msra.mxu1 %v2378_v16  ;;  %v2737_v16 = vld [vmem:[%s4046_s1 + $0x424] sm:$0xf]  ;;  %v2535_v0 = vld [vmem:[%s4046_s1 + $0x4a8] sm:$0xf0] }
  0x94   : > { %1607 = vmatpush.bf16.msra.mxu2 %v2394_v8  ;;  %v2538_v2 = vor.u32 %v2753_v62, %v2535_v0 }
  0x95   : > { %1619 = vmatpush.bf16.msra.mxu3 %v2506_v25  ;;  %v2474_v25 = vor.u32 %v2737_v16, %v2471_v17 }
  0x96   : > { %1566 = vmatpush.bf16.msra.mxu0 %v2306_v31  ;;  %v2274_v31 = vor.u32 %v2687_v22, %v2271_v23 }
  0x97   : > { %1584 = vmatpush.bf16.msra.mxu1 %v2370_v49  ;;  %v2338_v49 = vor.u32 %v2703_v24, %v2335_v26 }
  0x98   : > { %2767 = vmatpush.bf16.msrb.mxu2 %v2578_v14 }
  0x99   : > { %1620 = vmatpush.bf16.msra.mxu3 %v2498_v36  ;;  %v2701_v36 = vld [vmem:[%s4046_s1 + $0x304] sm:$0xf] }
  0x9a   : > { %1567 = vmatpush.bf16.msra.mxu0 %v2298_v41  ;;  %v2330_v41 = vor.u32 %v2701_v36, %v2327_v37 }
  0x9b   : > { %1585 = vmatpush.bf16.msra.mxu1 %v2362_v54  ;;  %v2586_v54 = vor.u32 %v2765_v39, %v2583_v53 }
  0x9c   : > { %2768 = vmatpush.bf16.msrb.mxu2 %v2570_v34 }
  0x9d   : > { %1621 = vmatpush.bf16.msra.mxu3 %v2490_v50  ;;  %1505 = vmatmul.bf16.gmra.mxu0 %v3189_v47  ;;  %v2455_v47 = vld [vmem:[%s4046_s1 + $0x408] sm:$0xf0]  ;;  %v2543_v50 = vld [vmem:[%s4046_s1 + $0x4b8] sm:$0xf0] }
  0x9e   : > { %1568 = vmatpush.bf16.msra.mxu0 %v2290_v3  ;;  %1523 = vmatmul.bf16.gmra.mxu1 %v3191_v48  ;;  %v2759_v48 = vld [vmem:[%s4046_s1 + $0x4d4] sm:$0xf]  ;;  %v2458_v43 = vor.u32 %v2733_v38, %v2455_v47  ;;  %v2546_v56 = vor.u32 %v2755_v44, %v2543_v50 }
  0x9f   : > { %1586 = vmatpush.bf16.msra.mxu1 %v2354_v4  ;;  %1541 = vmatmul.bf16.gmra.mxu2 %v3199_v55  ;;  %v2559_v55 = vld [vmem:[%s4046_s1 + $0x4d8] sm:$0xf0]  ;;  %v2751_v3 = vld [vmem:[%s4046_s1 + $0x494] sm:$0xf] }
  0xa0   : > { %1559 = vmatmul.bf16.gmra.mxu3 %v3404_v45  ;;  %v2562_v58 = vor.u32 %v2759_v48, %v2559_v55  ;;  %v2757_v45 = vld [vmem:[%s4046_s1 + $0x4c4] sm:$0xf]  ;;  %v2527_v4 = vld [vmem:[%s4046_s1 + $0x498] sm:$0xf0] }
  0xa1   : > { %1622 = vmatpush.bf16.msra.mxu3 %v2482_v9  ;;  %v2554_v46 = vor.u32 %v2757_v45, %v2551_v42 }
  0xa2   : > { %1569 = vmatpush.bf16.msra.mxu0 %v2282_v18  ;;  %2769 = vmatpush.bf16.msrb.mxu2 %v2562_v58 }
  0xa3   : > { %1587 = vmatpush.bf16.msra.mxu1 %v2346_v19 }
  0xa5   : > { %1623 = vmatpush.bf16.msra.mxu3 %v2474_v25 }
  0xa6   : > { %1570 = vmatpush.bf16.msra.mxu0 %v2274_v31  ;;  %2770 = vmatpush.bf16.msrb.mxu2 %v2554_v46 }
  0xa7   : > { %1588 = vmatpush.bf16.msra.mxu1 %v2338_v49 }
  0xa9   : > { %1624 = vmatpush.bf16.msra.mxu3 %v2466_v35 }
  0xaa   : > { %1571 = vmatpush.bf16.msra.mxu0 %v2266_v40  ;;  %v1285_v51 = vpop.f32.mrf.mxu0  ;;  %2771 = vmatpush.bf16.msrb.mxu2 %v2546_v56 }
  0xab   : > { %1589 = vmatpush.bf16.msra.mxu1 %v2330_v41  ;;  %v1303_v52 = vpop.f32.mrf.mxu1 }
  0xad   : > { %1625 = vmatpush.bf16.msra.mxu3 %v2458_v43  ;;  %1572 = vmatmul.bf16.vlgmr.msra.gmra.mxu0 %v3311_v57 }
  0xae   : > { %1636 = vmatpush.bf16.msrb.mxu0 %v2578_v14  ;;  %1590 = vmatmul.bf16.vlgmr.msra.gmra.mxu1 %v3313_v59  ;;  %v2530_v59 = vor.u32 %v2751_v3, %v2527_v4 }
  0xaf   : > { %1661 = vmatpush.bf16.msrb.mxu1 %v2586_v54  ;;  %1608 = vmatmul.bf16.vlgmr.msra.gmra.mxu2 %v3321_v63  ;;  %v2749_v63 = vld [vmem:[%s4046_s1 + $0x484] sm:$0xf] }
  0xb0   : > { %1626 = vmatmul.bf16.vlgmr.msra.gmra.mxu3 %v3524_v5  ;;  %2772 = vmatpush.bf16.msrb.mxu2 %v2538_v2  ;;  %v2519_v5 = vld [vmem:[%s4046_s1 + $0x488] sm:$0xf0] }
  0xb1   : > { %2775 = vmatpush.bf16.msrb.mxu3 %v2586_v54  ;;  %v2522_v9 = vor.u32 %v2749_v63, %v2519_v5 }
  0xb2   : > { %1637 = vmatpush.bf16.msrb.mxu0 %v2570_v34  ;;  %v1321_v6 = vpop.f32.mrf.mxu2  ;;  %v1287_v7 = vpop.f32.mrf.mxu0 }
  0xb3   : > { %v1339_v57 = vpop.f32.mrf.mxu3  ;;  %v1305_v8 = vpop.f32.mrf.mxu1 }
  0xb4   : > { %2773 = vmatpush.bf16.msrb.mxu2 %v2530_v59 }
  0xb6   : > { %1638 = vmatpush.bf16.msrb.mxu0 %v2562_v58 }
  0xb8   : > { %2774 = vmatpush.bf16.msrb.mxu2 %v2522_v9 }
  0xba   : > { %1639 = vmatpush.bf16.msrb.mxu0 %v2554_v46  ;;  %v1323_v12 = vpop.f32.mrf.mxu2  ;;  %v1290_v13 = vpop.f32.mrf.mxu0 }
  0xbb   : > { %v1341_v14 = vpop.f32.mrf.mxu3  ;;  %v1308_v16 = vpop.f32.mrf.mxu1 }
  0xbd   : > { %1577 = vmatmul.bf16.gmra.mxu0 %v3415_v60  ;;  %v362_v60 = vperm.slane %v3936_v27, 0 }
  0xbe   : > { %1640 = vmatpush.bf16.msrb.mxu0 %v2546_v56  ;;  %1595 = vmatmul.bf16.gmra.mxu1 %v3417_v61 }
  0xbf   : > { %1613 = vmatmul.bf16.gmra.mxu2 %v3425_v1  ;;  %v1286_v29 = vadd.f32 %v1285_v51, %v362_v60  ;;  %v1291_v39 = vadd.f32 %v1290_v13, %v362_v60 }
  0xc0   : > { %1631 = vmatmul.bf16.gmra.mxu3 %v3633_v15 }
  0xc1   : > { %v1304_v30 = vadd.f32 %v1303_v52, %v1286_v29  ;;  %v1309_v55 = vadd.f32 %v1308_v16, %v1291_v39  ;;  %v363_v39 = vperm.slane %v3936_v27, 1 }
  0xc2   : > { %1641 = vmatpush.bf16.msrb.mxu0 %v2538_v2  ;;  %v1326_v17 = vpop.f32.mrf.mxu2  ;;  %v1292_v18 = vpop.f32.mrf.mxu0 }
  0xc3   : > { %v1344_v19 = vpop.f32.mrf.mxu3  ;;  %v1310_v22 = vpop.f32.mrf.mxu1  ;;  %v1322_v49 = vadd.f32 %v1321_v6, %v1304_v30  ;;  %v1327_v54 = vadd.f32 %v1326_v17, %v1309_v55 }
  0xc5   : > { %v1340_v34 = vadd.f32 %v1339_v57, %v1322_v49  ;;  %v1345_v51 = vadd.f32 %v1344_v19, %v1327_v54 }
  0xc6   : > { %1642 = vmatpush.bf16.msrb.mxu0 %v2530_v59 }
  0xca   : > { %1643 = vmatpush.bf16.msrb.mxu0 %v2522_v9  ;;  %v1328_v23 = vpop.f32.mrf.mxu2  ;;  %v1357_v25 = vpop.f32.mrf.mxu0 }
  0xcb   : > { %v1346_v24 = vpop.f32.mrf.mxu3  ;;  %v1375_v26 = vpop.f32.mrf.mxu1 }
  0xcd   : > { %1644 = vmatmul.bf16.vlgmr.msrb.gmra.mxu0 %v3535_v10 }
  0xce   : > { %2589 = vmatmul.msk.bf16.vlgmr.msrb.gmra.mxu1 %vm1269_vm0, %v3537_v11  ;;  %v1358_v11 = vadd.f32 %v1357_v25, %v1340_v34 }
  0xcf   : > { %1649 = vmatmul.bf16.vlgmr.msrb.gmra.mxu2 %v3644_v20  ;;  %v1288_v20 = vadd.f32 %v1287_v7, %v362_v60 }
  0xd0   : > { %2590 = vmatmul.msk.bf16.vlgmr.msrb.gmra.mxu3 %vm1269_vm0, %v3646_v21  ;;  %v1376_v53 = vadd.f32 %v1375_v26, %v1358_v11 }
  0xd1   : > { %v1306_v35 = vadd.f32 %v1305_v8, %v1288_v20 }
  0xd2   : > { %v1393_v61 = vpop.f32.mrf.mxu2  ;;  %v1359_v1 = vpop.f32.mrf.mxu0 }
  0xd3   : > { %v1411_v15 = vpop.f32.mrf.mxu3  ;;  %v1377_v28 = vpop.f32.mrf.mxu1  ;;  %v1324_v37 = vadd.f32 %v1323_v12, %v1306_v35  ;;  %v1394_v48 = vadd.f32 %v1393_v61, %v1376_v53 }
  0xd5   : > { %v1342_v40 = vadd.f32 %v1341_v14, %v1324_v37  ;;  %v1412_v58 = vadd.f32 %v1411_v15, %v1394_v48 }
  0xd7   : > { %v1360_v41 = vadd.f32 %v1359_v1, %v1342_v40 }
  0xd9   : > { %v1378_v44 = vadd.f32 %v1377_v28, %v1360_v41 }
  0xda   : > { %v1395_v31 = vpop.f32.mrf.mxu2  ;;  %v1362_v32 = vpop.f32.mrf.mxu0 }
  0xdb   : > { %v1413_v10 = vpop.f32.mrf.mxu3  ;;  %v1380_v33 = vpop.f32.mrf.mxu1  ;;  %v1396_v52 = vadd.f32 %v1395_v31, %v1378_v44  ;;  %v1363_v56 = vadd.f32 %v1362_v32, %v1345_v51 }
  0xdd   : > { %v1414_v2 = vadd.f32 %v1413_v10, %v1396_v52  ;;  %v1381_v57 = vadd.f32 %v1380_v33, %v1363_v56 }
  0xe2   : > { %v1398_v36 = vpop.f32.mrf.mxu2  ;;  %v1364_v21 = vpop.f32.mrf.mxu0 }
  0xe3   : > { %v1416_v38 = vpop.f32.mrf.mxu3  ;;  %v1382_v47 = vpop.f32.mrf.mxu1  ;;  %v1399_v63 = vadd.f32 %v1398_v36, %v1381_v57 }
  0xe5   : > { %v1417_v12 = vadd.f32 %v1416_v38, %v1399_v63 }
  0xea   : > { %v1400_v43 = vpop.f32.mrf.mxu2  ;;  %v1429_v42 = vpop.f32.mrf.mxu0 }
  0xeb   : > { %v1418_v45 = vpop.f32.mrf.mxu3  ;;  %v1447_v46 = vpop.f32.mrf.mxu1  ;;  %v1430_v50 = vadd.f32 %v1429_v42, %v1412_v58 }
  0xed   : > { %v1448_v62 = vadd.f32 %v1447_v46, %v1430_v50 }
  0xf2   : > { %v1465_v0 = vpop.f32.mrf.mxu2  ;;  %v1431_v4 = vpop.f32.mrf.mxu0 }
  0xf3   : > { %v3945_v3 = vadd.f32 %v1465_v0, %v1448_v62  ;;  %v1483_v6 = vpop.f32.mrf.mxu3  ;;  %v1449_v7 = vpop.f32.mrf.mxu1  ;;  %v1432_v8 = vadd.f32 %v1431_v4, %v1414_v2 }
  0xf4   : > { %v1484_v40 = vadd.f32 %v1483_v6, %v363_v39 }
  0xf5   : > { %v3949_v59 = vmul.f32 %v3945_v3, %v3945_v3  ;;  %v1450_v5 = vadd.f32 %v1449_v7, %v1432_v8 }
  0xf7   : > { %1678 = vrot.lane.b32.xlu0 %v3949_v59, %s2807_s4 }
  0xfa   : > { %v1467_v9 = vpop.f32.mrf.mxu2  ;;  %v1434_v14 = vpop.f32.mrf.mxu0 }
  0xfb   : > { %v3953_v13 = vadd.f32 %v1467_v9, %v1450_v5  ;;  %v1485_v16 = vpop.f32.mrf.mxu3  ;;  %v1452_v17 = vpop.f32.mrf.mxu1  ;;  %v1435_v19 = vadd.f32 %v1434_v14, %v1417_v12 }
  0xfc   : > { %v1486_v45 = vadd.f32 %v1485_v16, %v363_v39 }
  0xfd   : > { %v3957_v18 = vmul.f32 %v3953_v13, %v3953_v13  ;;  %v1453_v22 = vadd.f32 %v1452_v17, %v1435_v19 }
  0xff   : > { %1680 = vrot.lane.b32.xlu0 %v3957_v18, %s2807_s4 }
 0x102   : > { %v1470_v23 = vpop.f32.mrf.mxu2  ;;  %v1436_v25 = vpop.f32.mrf.mxu0 }
 0x103   : > { %v3961_v24 = vadd.f32 %v1470_v23, %v1453_v22  ;;  %v1488_v26 = vpop.f32.mrf.mxu3  ;;  %v1454_v60 = vpop.f32.mrf.mxu1 }
 0x104   : > { %v1489_v51 = vadd.f32 %v1488_v26, %v363_v39 }
 0x105   : > { %v3965_v61 = vmul.f32 %v3961_v24, %v3961_v24 }
 0x107   : > { %1682 = vrot.lane.b32.xlu1 %v3965_v61, %s2807_s4 }
 0x10a   : > { %v1472_v1 = vpop.f32.mrf.mxu2  ;;  %v1501_v28 = vpop.f32.mrf.mxu0 }
 0x10b   : > { %v1490_v15 = vpop.f32.mrf.mxu3  ;;  %v1519_v29 = vpop.f32.mrf.mxu1  ;;  %v1502_v43 = vadd.f32 %v1501_v28, %v1484_v40 }
 0x10d   : > { %v1520_v58 = vadd.f32 %v1519_v29, %v1502_v43 }
 0x112   : > { %v1537_v30 = vpop.f32.mrf.mxu2  ;;  %v1503_v31 = vpop.f32.mrf.mxu0 }
 0x113   : > { %v1555_v49 = vpop.f32.mrf.mxu3  ;;  %v1521_v32 = vpop.f32.mrf.mxu1  ;;  %v1538_v42 = vadd.f32 %v1537_v30, %v1520_v58  ;;  %v1504_v52 = vadd.f32 %v1503_v31, %v1486_v45 }
 0x115   : > { %v1556_v62 = vadd.f32 %v1555_v49, %v1538_v42  ;;  %v1522_v0 = vadd.f32 %v1521_v32, %v1504_v52 }
 0x11a   : > { %v1539_v10 = vpop.f32.mrf.mxu2  ;;  %v1506_v33 = vpop.f32.mrf.mxu0 }
 0x11b   : > { %v1557_v20 = vpop.f32.mrf.mxu3  ;;  %v1524_v34 = vpop.f32.mrf.mxu1  ;;  %v1507_v2 = vadd.f32 %v1506_v33, %v1489_v51  ;;  %v1540_v4 = vadd.f32 %v1539_v10, %v1522_v0 }
 0x11d   : > { %v1525_v8 = vadd.f32 %v1524_v34, %v1507_v2  ;;  %v1558_v9 = vadd.f32 %v1557_v20, %v1540_v4 }
 0x122   : > { %v1542_v35 = vpop.f32.mrf.mxu2  ;;  %v1508_v11 = vpop.f32.mrf.mxu0 }
 0x123   : > { %v1560_v36 = vpop.f32.mrf.mxu3  ;;  %v1526_v37 = vpop.f32.mrf.mxu1  ;;  %v1543_v12 = vadd.f32 %v1542_v35, %v1525_v8 }
 0x125   : > { %v1561_v17 = vadd.f32 %v1560_v36, %v1543_v12 }
 0x12a   : > { %v1544_v21 = vpop.f32.mrf.mxu2  ;;  %v1573_v47 = vpop.f32.mrf.mxu0 }
 0x12b   : > { %v1562_v38 = vpop.f32.mrf.mxu3  ;;  %v1591_v53 = vpop.f32.mrf.mxu1  ;;  %v1574_v27 = vadd.f32 %v1573_v47, %v1556_v62 }
 0x12d   : > { %v1592_v63 = vadd.f32 %v1591_v53, %v1574_v27 }
 0x132   : > { %v1609_v48 = vpop.f32.mrf.mxu2  ;;  %v1575_v55 = vpop.f32.mrf.mxu0 }
 0x133   : > { %v1627_v41 = vpop.f32.mrf.mxu3  ;;  %v1593_v54 = vpop.f32.mrf.mxu1  ;;  %v1610_v14 = vadd.f32 %v1609_v48, %v1592_v63  ;;  %v1576_v16 = vadd.f32 %v1575_v55, %v1558_v9  ;;  %v1690_v48 = vlaneseq }
 0x135   : > { %v1628_v19 = vadd.f32 %v1627_v41, %v1610_v14  ;;  %v1594_v26 = vadd.f32 %v1593_v54, %v1576_v16  ;;  %v3985_v55 = vand.u32 127, %v1690_v48 }
 0x137   : > { %vm1692_vm1 = vcmp.lt.s32.totalorder %v3985_v55, 32  ;;  %vm1717_vm2 = vcmp.lt.s32.totalorder %v3985_v55, 64 }
 0x13a   : > { %v1611_v46 = vpop.f32.mrf.mxu2  ;;  %v1578_v44 = vpop.f32.mrf.mxu0 }
 0x13b   : > { %v1629_v50 = vpop.f32.mrf.mxu3  ;;  %v1596_v56 = vpop.f32.mrf.mxu1  ;;  %v1579_v60 = vadd.f32 %v1578_v44, %v1561_v17  ;;  %v1612_v28 = vadd.f32 %v1611_v46, %v1594_v26 }
 0x13d   : > { %v1597_v30 = vadd.f32 %v1596_v56, %v1579_v60  ;;  %v1630_v49 = vadd.f32 %v1629_v50, %v1612_v28 }
 0x142   : > { %v1614_v6 = vpop.f32.mrf.mxu2  ;;  %v1580_v7 = vpop.f32.mrf.mxu0 }
 0x143   : > { %v1632_v57 = vpop.f32.mrf.mxu3  ;;  %v1598_v5 = vpop.f32.mrf.mxu1  ;;  %v1615_v32 = vadd.f32 %v1614_v6, %v1597_v30 }
 0x145   : > { %v1633_v11 = vadd.f32 %v1632_v57, %v1615_v32 }
 0x14a   : > { %v1616_v22 = vpop.f32.mrf.mxu2  ;;  %v1645_v25 = vpop.f32.mrf.mxu0 }
 0x14b   : > { %v1634_v23 = vpop.f32.mrf.mxu3  ;;  %v1646_v1 = vadd.f32 %v1645_v25, %v1628_v19  ;;  %v1663_v15 = vpop.f32.mrf.mxu1 }
 0x14d   : > { %v3970_v29 = vadd.f32 %v1663_v15, %v1646_v1 }
 0x14f   : > { %v1673_v31 = vmul.f32 %v3970_v29, %v3970_v29 }
 0x151   : > { %1684 = vrot.lane.b32.xlu1 %v1673_v31, %s2807_s4 }
 0x152   : > { %v1650_v10 = vpop.f32.mrf.mxu2  ;;  %v1647_v33 = vpop.f32.mrf.mxu0 }
 0x153   : > { %v1668_v20 = vpop.f32.mrf.mxu3  ;;  %v1648_v34 = vadd.f32 %v1647_v33, %v1630_v49  ;;  %v1665_v35 = vpop.f32.mrf.mxu1  ;;  %v1651_v37 = vadd.f32 %v1650_v10, %v1633_v11 }
 0x155   : > { %v3975_v36 = vadd.f32 %v1665_v35, %v1648_v34  ;;  %v3980_v39 = vadd.f32 %v1668_v20, %v1651_v37 }
 0x157   : > { %v1675_v21 = vmul.f32 %v3975_v36, %v3975_v36  ;;  %v1677_v53 = vmul.f32 %v3980_v39, %v3980_v39 }
 0x159   : > { %1686 = vrot.lane.b32.xlu2 %v1675_v21, %s2807_s4 }
 0x15a   : > { %v1652_v38 = vpop.f32.mrf.mxu2 }
 0x15b   : > { %v1670_v47 = vpop.f32.mrf.mxu3 }
 0x161   : > { %1688 = vrot.lane.b32.xlu2 %v1677_v53, %s2807_s4 }
 0x169   : > { %v1679_v40 = vpop.permute.xlu0 %1678 }
 0x171   : > { %v1681_v41 = vpop.permute.xlu0 %1680 }
 0x179   : > { %v1683_v42 = vpop.permute.xlu1 %1682 }
 0x1b3   : > { %v1687_v43 = vpop.permute.xlu2 %1686 }
 0x1b4   : > { %v1697_v54 = vsel %vm1692_vm1, %v1687_v43, %v1681_v41  ;;  %v1694_v45 = vsel %vm1692_vm1, %v1681_v41, %v1687_v43 }
 0x1b5   : > { %v1701_v58 = vadd.f32 %v1697_v54, %v3957_v18  ;;  %v1702_v50 = vadd.f32 %v1694_v45, %v1675_v21 }
 0x1b7   : > { %1707 = vrot.lane.b32.xlu1 %v1701_v58, %s2808_s5 }
 0x1bb   : > { %v1689_v46 = vpop.permute.xlu2 %1688 }
 0x1bc   : > { %v1698_v44 = vsel %vm1692_vm1, %v1689_v46, %v1683_v42  ;;  %v1695_v52 = vsel %vm1692_vm1, %v1683_v42, %v1689_v46 }
 0x1bd   : > { %v1703_v51 = vadd.f32 %v1698_v44, %v3965_v61  ;;  %v1704_v62 = vadd.f32 %v1695_v52, %v1677_v53 }
 0x1bf   : > { %1709 = vrot.lane.b32.xlu2 %v1703_v51, %s2808_s5  ;;  %1713 = vrot.lane.b32.xlu1 %v1702_v50, %s2808_s5 }
 0x1c3   : > { %v1685_v56 = vpop.permute.xlu1 %1684 }
 0x1c4   : > { %v1696_v18 = vsel %vm1692_vm1, %v1685_v56, %v1679_v40  ;;  %v1693_v2 = vsel %vm1692_vm1, %v1679_v40, %v1685_v56 }
 0x1c5   : > { %v4001_v0 = vadd.f32 %v1696_v18, %v3949_v59  ;;  %v4006_v61 = vadd.f32 %v1693_v2, %v1673_v31 }
 0x1c7   : > { %1715 = vrot.lane.b32.xlu2 %v1704_v62, %s2808_s5  ;;  %1705 = vrot.lane.b32.xlu0 %v4001_v0, %s2808_s5 }
 0x1cf   : > { %1711 = vrot.lane.b32.xlu0 %v4006_v61, %s2808_s5 }
 0x219   : > { %v1710_v27 = vpop.permute.xlu2 %1709 }
 0x221   : > { %v1716_v4 = vpop.permute.xlu2 %1715 }
 0x222   : > { %v1720_v6 = vsel %vm1717_vm2, %v1710_v27, %v1716_v4  ;;  %v1723_v59 = vsel %vm1717_vm2, %v1716_v4, %v1710_v27 }
 0x223   : > { %v1728_v7 = vadd.f32 %v1723_v59, %v1703_v51  ;;  %v1729_v57 = vadd.f32 %v1720_v6, %v1704_v62 }
 0x225   : > { %v1732_v8 = vadd.f32 %v1729_v57, %v1728_v7 }
 0x227   : > { %2787 = vrsqrt.f32 %v1732_v8  ;;  %v1771_v63 = vadd.f32 1.0, %v1732_v8  ;;  %vm1764_vm6 = vcmp.eq.f32.partialorder %v1732_v8, inf  ;;  %v1767_v34 = vand.u32 2147483648, %v1732_v8 }
 0x228   : > { %vm1766_vm7 = vcmp.eq.f32.partialorder %v1732_v8, 0.0 }
 0x229   : > { %v1708_v5 = vpop.permute.xlu1 %1707  ;;  %2789 = vrcp.f32 %v1771_v63  ;;  %v1813_v30 = vand.u32 2147483648, %v1771_v63  ;;  %v1811_v32 = vand.u32 2147483647, %v1771_v63  ;;  %vm1807_vm4 = vweird.f32 %v1771_v63 }
 0x22b   : > { %v1814_v11 = vor.u32 1.1754944e-38, %v1813_v30  ;;  %vm1812_vm8 = vcmp.eq.f32.partialorder %v1811_v32, 8.507059e+37 }
 0x22d   : > { %v2788_v9 = vpop.eup %2787 }
 0x22e   : > { %v1758_v12 = vmul.f32 %v2788_v9, %v1732_v8 }
 0x22f   : > { %v2790_v14 = vpop.eup %2789 }
 0x230   : > { %v1759_v16 = vmul.f32 %v2788_v9, %v1758_v12  ;;  %v1803_v17 = vmul.f32 %v2790_v14, %v1771_v63  ;;  %vm1808_vm3 = vweird.f32 %v2790_v14 }
 0x231   : > { %v1714_v19 = vpop.permute.xlu1 %1713  ;;  %vm1809_vm5 = vmor %vm1807_vm4, %vm1808_vm3 }
 0x232   : > { %v1760_v22 = vmul.f32 0.5, %v1759_v16  ;;  %v1719_v23 = vsel %vm1717_vm2, %v1708_v5, %v1714_v19  ;;  %v1722_v25 = vsel %vm1717_vm2, %v1714_v19, %v1708_v5  ;;  %v1804_v26 = vsub.f32 1.0, %v1803_v17 }
 0x233   : > { %v1726_v60 = vadd.f32 %v1722_v25, %v1701_v58  ;;  %v1727_v1 = vadd.f32 %v1719_v23, %v1702_v50 }
 0x234   : > { %v1761_v15 = vsub.f32 1.5, %v1760_v22  ;;  %v1805_v28 = vmul.f32 %v2790_v14, %v1804_v26 }
 0x235   : > { %v1731_v31 = vadd.f32 %v1727_v1, %v1726_v60 }
 0x236   : > { %v1762_v49 = vmul.f32 %v2788_v9, %v1761_v15  ;;  %v1806_v10 = vadd.f32 %v2790_v14, %v1805_v28 }
 0x237   : > { %2791 = vrsqrt.f32 %v1731_v31  ;;  %v1770_v20 = vadd.f32 1.0, %v1731_v31  ;;  %vm1752_vm12 = vcmp.eq.f32.partialorder %v1731_v31, inf  ;;  %v1755_v55 = vand.u32 2147483648, %v1731_v31 }
 0x238   : > { %v1763_v33 = vmul.f32 %v1762_v49, %v1732_v8  ;;  %v1810_v35 = vsel %vm1809_vm5, %v2790_v14, %v1806_v10  ;;  %vm1754_vm13 = vcmp.eq.f32.partialorder %v1731_v31, 0.0 }
 0x239   : > { %v1706_v37 = vpop.permute.xlu0 %1705  ;;  %2793 = vrcp.f32 %v1770_v20  ;;  %v1815_v47 = vsel %vm1812_vm8, %v1814_v11, %v1810_v35  ;;  %v1798_v18 = vand.u32 2147483648, %v1770_v20  ;;  %v1796_v27 = vand.u32 2147483647, %v1770_v20 }
 0x23a   : > { %v1765_v21 = vsel %vm1764_vm6, %v1732_v8, %v1763_v33  ;;  %vm1792_vm10 = vweird.f32 %v1770_v20 }
 0x23b   : > { %v1768_v38 = vsel %vm1766_vm7, %v1767_v34, %v1765_v21  ;;  %vm1797_vm14 = vcmp.eq.f32.partialorder %v1796_v27, 8.507059e+37 }
 0x23c   : > { %v1816_v53 = vmul.f32 %v1815_v47, %v1768_v38 }
 0x23d   : > { %v2792_v40 = vpop.eup %2791 }
 0x23e   : > { %v1821_v48 = vmul.f32 %v1816_v53, %v3961_v24  ;;  %v1822_v41 = vmul.f32 %v1816_v53, %v3980_v39  ;;  %v1746_v43 = vmul.f32 %v2792_v40, %v1731_v31 }
 0x23f   : > { %v2794_v54 = vpop.eup %2793 }
 0x240   : > { %1827 = vst [vmem:[%s4022_s7 + $0x20] sm:$0xff] %v1821_v48  ;;  %v1747_v58 = vmul.f32 %v2792_v40, %v1746_v43  ;;  %v1788_v45 = vmul.f32 %v2794_v54, %v1770_v20  ;;  %vm1793_vm9 = vweird.f32 %v2794_v54 }
 0x241   : > { %1828 = vst [vmem:[%s4022_s7 + $0x28] sm:$0xff] %v1822_v41  ;;  %v1712_v42 = vpop.permute.xlu0 %1711  ;;  %vm1794_vm11 = vmor %vm1792_vm10, %vm1793_vm9 }
 0x242   : > { %v1748_v46 = vmul.f32 0.5, %v1747_v58  ;;  %v1718_v44 = vsel %vm1717_vm2, %v1706_v37, %v1712_v42  ;;  %v1721_v50 = vsel %vm1717_vm2, %v1712_v42, %v1706_v37  ;;  %v1789_v51 = vsub.f32 1.0, %v1788_v45 }
 0x243   : > { %v1724_v52 = vadd.f32 %v1721_v50, %v4001_v0  ;;  %v1725_v24 = vadd.f32 %v1718_v44, %v4006_v61  ;;  %v1799_v0 = vor.u32 1.1754944e-38, %v1798_v18 }
 0x244   : > { %v1749_v39 = vsub.f32 1.5, %v1748_v46  ;;  %v1790_v56 = vmul.f32 %v2794_v54, %v1789_v51 }
 0x245   : > { %v1730_v62 = vadd.f32 %v1725_v24, %v1724_v52 }
 0x246   : > { %v1750_v2 = vmul.f32 %v2792_v40, %v1749_v39  ;;  %v1791_v4 = vadd.f32 %v2794_v54, %v1790_v56 }
 0x247   : > { %2795 = vrsqrt.f32 %v1730_v62  ;;  %v1769_v59 = vadd.f32 1.0, %v1730_v62  ;;  %vm1740_vm2 = vcmp.eq.f32.partialorder %v1730_v62, inf  ;;  %vm1742_vm3 = vcmp.eq.f32.partialorder %v1730_v62, 0.0 }
 0x248   : > { %v1751_v6 = vmul.f32 %v1750_v2, %v1731_v31  ;;  %v1795_v7 = vsel %vm1794_vm11, %v2794_v54, %v1791_v4 }
 0x249   : > { %2797 = vrcp.f32 %v1769_v59  ;;  %v1800_v8 = vsel %vm1797_vm14, %v1799_v0, %v1795_v7  ;;  %v1783_v60 = vand.u32 2147483648, %v1769_v59  ;;  %v1781_v15 = vand.u32 2147483647, %v1769_v59 }
 0x24a   : > { %v1753_v61 = vsel %vm1752_vm12, %v1731_v31, %v1751_v6  ;;  %vm1777_vm0 = vweird.f32 %v1769_v59 }
 0x24b   : > { %v1756_v57 = vsel %vm1754_vm13, %v1755_v55, %v1753_v61  ;;  %v1784_v31 = vor.u32 1.1754944e-38, %v1783_v60  ;;  %vm1782_vm4 = vcmp.eq.f32.partialorder %v1781_v15, 8.507059e+37 }
 0x24c   : > { %v1801_v63 = vmul.f32 %v1800_v8, %v1756_v57 }
 0x24d   : > { %v2796_v5 = vpop.eup %2795 }
 0x24e   : > { %v1819_v9 = vmul.f32 %v1801_v63, %v3953_v13  ;;  %v1820_v12 = vmul.f32 %v1801_v63, %v3975_v36  ;;  %v1734_v14 = vmul.f32 %v2796_v5, %v1730_v62  ;;  %v1743_v36 = vand.u32 2147483648, %v1730_v62 }
 0x24f   : > { %v2798_v16 = vpop.eup %2797 }
 0x250   : > { %1825 = vst [vmem:[%s4022_s7 + $0x10] sm:$0xff] %v1819_v9  ;;  %v1735_v17 = vmul.f32 %v2796_v5, %v1734_v14  ;;  %v1773_v19 = vmul.f32 %v2798_v16, %v1769_v59  ;;  %vm1778_vm15 = vweird.f32 %v2798_v16 }
 0x251   : > { %1826 = vst [vmem:[%s4022_s7 + $0x18] sm:$0xff] %v1820_v12  ;;  %vm1779_vm1 = vmor %vm1777_vm0, %vm1778_vm15 }
 0x252   : > { %v1736_v22 = vmul.f32 0.5, %v1735_v17  ;;  %v1774_v23 = vsub.f32 1.0, %v1773_v19 }
 0x254   : > { %v1737_v25 = vsub.f32 1.5, %v1736_v22  ;;  %v1775_v26 = vmul.f32 %v2798_v16, %v1774_v23 }
 0x256   : > { %v1738_v1 = vmul.f32 %v2796_v5, %v1737_v25  ;;  %v1776_v28 = vadd.f32 %v2798_v16, %v1775_v26 }
 0x258   : > { %v1739_v13 = vmul.f32 %v1738_v1, %v1730_v62  ;;  %v1780_v30 = vsel %vm1779_vm1, %v2798_v16, %v1776_v28 }
 0x259   : > { %v1785_v10 = vsel %vm1782_vm4, %v1784_v31, %v1780_v30 }
 0x25a   : > { %v1741_v49 = vsel %vm1740_vm2, %v1730_v62, %v1739_v13 }
 0x25b   : > { %v1744_v32 = vsel %vm1742_vm3, %v1743_v36, %v1741_v49 }
 0x25c   : > { %v1786_v33 = vmul.f32 %v1785_v10, %v1744_v32 }
 0x25e   : > { %v1817_v20 = vmul.f32 %v1786_v33, %v3945_v3  ;;  %v1818_v34 = vmul.f32 %v1786_v33, %v3970_v29 }
 0x260   : > { %1823 = vst [vmem:[%s4022_s7] sm:$0xff] %v1817_v20 }
 0x261   : > { %1824 = vst [vmem:[%s4022_s7 + $0x8] sm:$0xff] %v1818_v34 }
 0x262 PF: > { %s13_s12 = sadd.s32 1, %s2805_s12  }
 0x263   : > { %p10_p4 = scmp.ge.s32.totalorder %s13_s12, 5  }
 0x265   :  { %12 = sbr.rel (!%p10_p4) target bundleno = 1 (0x1), region = 62 }

</bundles_post_ra>
